<compile_context>
chip_gen: v7x
topology: tpu7x:2x2x1
jax: 0.10.0
libtpu: 0.0.40
codegen_flags: <defaults>
</compile_context>

<pallas_src>
import functools

import jax
import jax.numpy as jnp
from jax.experimental import pallas as pl
from jax.experimental.pallas import tpu as pltpu


# ---------------------------------------------------------------------------
# Fused decoder-layer kernel: one grid step per batch element.
# ---------------------------------------------------------------------------
def _decoder_layer_kernel(dec_ref, enc_ref,
                          s_wq_ref, s_wk_ref, s_wv_ref, s_wfc_ref,
                          e_wq_ref, e_wk_ref, e_wv_ref, e_wfc_ref,
                          w1_ref, b1_ref, w2_ref, b2_ref,
                          out_ref, slf_attn_ref, enc_attn_ref,
                          *, n_head, d_k, d_v):
    x = dec_ref[0]        # (Ld, d_model), f32
    enc = enc_ref[0]      # (Le, d_model), f32

    def mha(q_in, kv_in, wq_ref, wk_ref, wv_ref, wfc_ref, attn_ref):
        # wq_ref:  (n_head, d_model, d_k)  -- 1/sqrt(d_k) already folded in
        # wk_ref:  (n_head, d_model, d_k)
        # wv_ref:  (n_head, d_model, d_v)
        # wfc_ref: (n_head, d_v, d_model)
        acc = q_in  # residual connection (dropout is identity at eval)
        for h in range(n_head):  # static unroll; per-head weights via leading-axis index
            qh = jnp.dot(q_in, wq_ref[h], preferred_element_type=jnp.float32)   # (Lq, d_k)
            kh = jnp.dot(kv_in, wk_ref[h], preferred_element_type=jnp.float32)  # (Lk, d_k)
            vh = jnp.dot(kv_in, wv_ref[h], preferred_element_type=jnp.float32)  # (Lk, d_v)

            # scores = qh @ kh^T without materializing a transpose
            scores = jax.lax.dot_general(
                qh, kh, (((1,), (1,)), ((), ())),
                preferred_element_type=jnp.float32)                             # (Lq, Lk)
            scores = scores - jnp.max(scores, axis=-1, keepdims=True)
            e = jnp.exp(scores)
            denom = jnp.sum(e, axis=-1, keepdims=True)
            attn = e * pl.reciprocal(denom, approx=True)                        # EUP divide
            attn_ref[0, h] = attn

            oh = jnp.dot(attn, vh, preferred_element_type=jnp.float32)          # (Lq, d_v)
            acc = acc + jnp.dot(oh, wfc_ref[h],
                                preferred_element_type=jnp.float32)             # (Lq, dm)
        return acc

    # self-attention, then encoder-decoder attention (activations stay in VMEM)
    x = mha(x, x, s_wq_ref, s_wk_ref, s_wv_ref, s_wfc_ref, slf_attn_ref)
    x = mha(x, enc, e_wq_ref, e_wk_ref, e_wv_ref, e_wfc_ref, enc_attn_ref)

    # position-wise FFN (weights pre-transposed: w1_t (dm, d_hid), w2_t (d_hid, dm))
    h1 = jnp.dot(x, w1_ref[...], preferred_element_type=jnp.float32) + b1_ref[...]
    h1 = jnp.maximum(h1, 0.0)
    y = jnp.dot(h1, w2_ref[...], preferred_element_type=jnp.float32) + b2_ref[...]
    out_ref[0] = y + x


# ---------------------------------------------------------------------------
# Wrapper: one-time weight layout prep + single pallas_call
# ---------------------------------------------------------------------------
def decoder_layer(dec_input, enc_output, params, *, n_head, d_k, d_v):
    bs, ld, dm = dec_input.shape
    le = enc_output.shape[1]
    temperature = float(d_k) ** 0.5

    def prep_mha(p):
        # (n_head*d_k, dm) -> (n_head, dm, d_k), scale folded into Wq
        wq_h = (p["wq"] / temperature).reshape(n_head, d_k, dm).transpose(0, 2, 1)
        wk_h = p["wk"].reshape(n_head, d_k, dm).transpose(0, 2, 1)
        wv_h = p["wv"].reshape(n_head, d_v, dm).transpose(0, 2, 1)
        # fc: (dm, n_head*d_v) -> per-head (d_v, dm)
        wfc_h = p["wfc"].reshape(dm, n_head, d_v).transpose(1, 2, 0)
        return wq_h, wk_h, wv_h, wfc_h

    s_wq, s_wk, s_wv, s_wfc = prep_mha(params["slf"])
    e_wq, e_wk, e_wv, e_wfc = prep_mha(params["enc"])

    pf = params["ffn"]
    d_hid = pf["w1"].shape[0]
    w1_t = pf["w1"].T                      # (dm, d_hid)
    b1 = pf["b1"].reshape(1, d_hid)
    w2_t = pf["w2"].T                      # (d_hid, dm)
    b2 = pf["b2"].reshape(1, dm)

    kernel = functools.partial(_decoder_layer_kernel,
                               n_head=n_head, d_k=d_k, d_v=d_v)

    out, slf_attn, enc_attn = pl.pallas_call(
        kernel,
        out_shape=(jax.ShapeDtypeStruct((bs, ld, dm), jnp.float32),
                   jax.ShapeDtypeStruct((bs, n_head, ld, ld), jnp.float32),
                   jax.ShapeDtypeStruct((bs, n_head, ld, le), jnp.float32)),
        grid=(bs,),
        in_specs=[
            pl.BlockSpec((1, ld, dm), lambda b: (b, 0, 0)),          # dec_input
            pl.BlockSpec((1, le, dm), lambda b: (b, 0, 0)),          # enc_output
            # self-attention weights (constant across batch grid)
            pl.BlockSpec((n_head, dm, d_k), lambda b: (0, 0, 0)),
            pl.BlockSpec((n_head, dm, d_k), lambda b: (0, 0, 0)),
            pl.BlockSpec((n_head, dm, d_v), lambda b: (0, 0, 0)),
            pl.BlockSpec((n_head, d_v, dm), lambda b: (0, 0, 0)),
            # enc-dec attention weights
            pl.BlockSpec((n_head, dm, d_k), lambda b: (0, 0, 0)),
            pl.BlockSpec((n_head, dm, d_k), lambda b: (0, 0, 0)),
            pl.BlockSpec((n_head, dm, d_v), lambda b: (0, 0, 0)),
            pl.BlockSpec((n_head, d_v, dm), lambda b: (0, 0, 0)),
            # FFN weights
            pl.BlockSpec((dm, d_hid), lambda b: (0, 0)),
            pl.BlockSpec((1, d_hid), lambda b: (0, 0)),
            pl.BlockSpec((d_hid, dm), lambda b: (0, 0)),
            pl.BlockSpec((1, dm), lambda b: (0, 0)),
        ],
        out_specs=(
            pl.BlockSpec((1, ld, dm), lambda b: (b, 0, 0)),
            pl.BlockSpec((1, n_head, ld, ld), lambda b: (b, 0, 0, 0)),
            pl.BlockSpec((1, n_head, ld, le), lambda b: (b, 0, 0, 0)),
        ),
        compiler_params=pltpu.CompilerParams(
            dimension_semantics=("parallel",)),   # v7x: batch sharded over both TCs
    )(dec_input, enc_output,
      s_wq, s_wk, s_wv, s_wfc,
      e_wq, e_wk, e_wv, e_wfc,
      w1_t, b1, w2_t, b2)
    return out, slf_attn, enc_attn


# ---------------------------------------------------------------------------
# Parameter init (matches the nn.Linear layouts of the PyTorch module)
# ---------------------------------------------------------------------------
def init_params(key, d_model, d_inner, n_head, d_k, d_v):
    ks = jax.random.split(key, 12)
    s = 0.1

    def lin(k, out_dim, in_dim):
        return jax.random.normal(k, (out_dim, in_dim), jnp.float32) * s

    return {
        "slf": {
            "wq": lin(ks[0], n_head * d_k, d_model),
            "wk": lin(ks[1], n_head * d_k, d_model),
            "wv": lin(ks[2], n_head * d_v, d_model),
            "wfc": lin(ks[3], d_model, n_head * d_v),
        },
        "enc": {
            "wq": lin(ks[4], n_head * d_k, d_model),
            "wk": lin(ks[5], n_head * d_k, d_model),
            "wv": lin(ks[6], n_head * d_v, d_model),
            "wfc": lin(ks[7], d_model, n_head * d_v),
        },
        "ffn": {
            "w1": lin(ks[8], d_inner, d_model),
            "b1": jax.random.normal(ks[9], (d_inner,), jnp.float32) * s,
            "w2": lin(ks[10], d_model, d_inner),
            "b2": jax.random.normal(ks[11], (d_model,), jnp.float32) * s,
        },
    }


# ---------------------------------------------------------------------------
# Pure-JAX reference for validation
# ---------------------------------------------------------------------------
def _mha_ref(q, k, v, wq, wk, wv, wfc, n_head, d_k, d_v):
    bs, lq, dm = q.shape
    lk = k.shape[1]
    residual = q
    qp = (q @ wq.T).reshape(bs, lq, n_head, d_k).transpose(0, 2, 1, 3)
    kp = (k @ wk.T).reshape(bs, lk, n_head, d_k).transpose(0, 2, 1, 3)
    vp = (v @ wv.T).reshape(bs, lk, n_head, d_v).transpose(0, 2, 1, 3)
    attn = jax.nn.softmax(
        jnp.einsum("bhqd,bhkd->bhqk", qp / (d_k ** 0.5), kp), axis=-1)
    out = jnp.einsum("bhqk,bhkd->bhqd", attn, vp)
    out = out.transpose(0, 2, 1, 3).reshape(bs, lq, n_head * d_v)
    out = out @ wfc.T + residual
    return out, attn


def _decoder_ref(dec_input, enc_output, params, n_head, d_k, d_v):
    p = params["slf"]
    x, a1 = _mha_ref(dec_input, dec_input, dec_input,
                     p["wq"], p["wk"], p["wv"], p["wfc"], n_head, d_k, d_v)
    p = params["enc"]
    x, a2 = _mha_ref(x, enc_output, enc_output,
                     p["wq"], p["wk"], p["wv"], p["wfc"], n_head, d_k, d_v)
    p = params["ffn"]
    h = jnp.maximum(x @ p["w1"].T + p["b1"], 0.0)
    x = h @ p["w2"].T + p["b2"] + x
    return x, a1, a2


if __name__ == "__main__":
    d_model, d_inner, n_head, d_k, d_v = 32, 64, 4, 8, 8
    bs, len_dec, len_enc = 2, 8, 16

    key = jax.random.PRNGKey(0)
    k_in, k_enc, k_par = jax.random.split(key, 3)
    dec_input = jax.random.normal(k_in, (bs, len_dec, d_model), jnp.float32)
    enc_output = jax.random.normal(k_enc, (bs, len_enc, d_model), jnp.float32)
    params = init_params(k_par, d_model, d_inner, n_head, d_k, d_v)

    out, slf_attn, enc_attn = decoder_layer(
        dec_input, enc_output, params, n_head=n_head, d_k=d_k, d_v=d_v)
    out = jax.block_until_ready(out)
    slf_attn = jax.block_until_ready(slf_attn)
    enc_attn = jax.block_until_ready(enc_attn)

    # validate against a pure-JAX reference (tolerance covers the EUP
    # approximate-reciprocal softmax normalization)
    ref_out, ref_slf, ref_enc = _decoder_ref(
        dec_input, enc_output, params, n_head, d_k, d_v)
    assert out.shape == (bs, len_dec, d_model)
    assert slf_attn.shape == (bs, n_head, len_dec, len_dec)
    assert enc_attn.shape == (bs, n_head, len_dec, len_enc)
    assert jnp.allclose(out, ref_out, atol=2e-3, rtol=2e-3)
    assert jnp.allclose(slf_attn, ref_slf, atol=2e-3, rtol=2e-3)
    assert jnp.allclose(enc_attn, ref_enc, atol=2e-3, rtol=2e-3)

    print("KERNEL_OK")
</pallas_src>

<mosaic_0001>
module attributes {stable_mosaic.version = 11 : i64} {
  func.func @_decoder_layer_kernel(%arg0: i32, %arg1: memref<1x8x32xf32, #tpu.memory_space<vmem>>, %arg2: memref<1x16x32xf32, #tpu.memory_space<vmem>>, %arg3: memref<4x32x8xf32, #tpu.memory_space<vmem>>, %arg4: memref<4x32x8xf32, #tpu.memory_space<vmem>>, %arg5: memref<4x32x8xf32, #tpu.memory_space<vmem>>, %arg6: memref<4x8x32xf32, #tpu.memory_space<vmem>>, %arg7: memref<4x32x8xf32, #tpu.memory_space<vmem>>, %arg8: memref<4x32x8xf32, #tpu.memory_space<vmem>>, %arg9: memref<4x32x8xf32, #tpu.memory_space<vmem>>, %arg10: memref<4x8x32xf32, #tpu.memory_space<vmem>>, %arg11: memref<32x64xf32, #tpu.memory_space<vmem>>, %arg12: memref<1x64xf32, #tpu.memory_space<vmem>>, %arg13: memref<64x32xf32, #tpu.memory_space<vmem>>, %arg14: memref<1x32xf32, #tpu.memory_space<vmem>>, %arg15: memref<1x8x32xf32, #tpu.memory_space<vmem>>, %arg16: memref<1x4x8x8xf32, #tpu.memory_space<vmem>>, %arg17: memref<1x4x8x16xf32, #tpu.memory_space<vmem>>) attributes {dimension_semantics = [#tpu.dimension_semantics<parallel>], iteration_bounds = array<i64: 2>, scalar_prefetch = 0 : i64, scratch_operands = 0 : i64, tpu.core_type = #tpu.core_type<tc>, window_params = [{transform_indices = @transform_0, window_bounds = array<i64: 1, 8, 32>}, {transform_indices = @transform_1, window_bounds = array<i64: 1, 16, 32>}, {pipeline_mode = #tpu.pipeline_mode<synchronous>, transform_indices = @transform_2, window_bounds = array<i64: 4, 32, 8>}, {pipeline_mode = #tpu.pipeline_mode<synchronous>, transform_indices = @transform_3, window_bounds = array<i64: 4, 32, 8>}, {pipeline_mode = #tpu.pipeline_mode<synchronous>, transform_indices = @transform_4, window_bounds = array<i64: 4, 32, 8>}, {pipeline_mode = #tpu.pipeline_mode<synchronous>, transform_indices = @transform_5, window_bounds = array<i64: 4, 8, 32>}, {pipeline_mode = #tpu.pipeline_mode<synchronous>, transform_indices = @transform_6, window_bounds = array<i64: 4, 32, 8>}, {pipeline_mode = #tpu.pipeline_mode<synchronous>, transform_indices = @transform_7, window_bounds = array<i64: 4, 32, 8>}, {pipeline_mode = #tpu.pipeline_mode<synchronous>, transform_indices = @transform_8, window_bounds = array<i64: 4, 32, 8>}, {pipeline_mode = #tpu.pipeline_mode<synchronous>, transform_indices = @transform_9, window_bounds = array<i64: 4, 8, 32>}, {pipeline_mode = #tpu.pipeline_mode<synchronous>, transform_indices = @transform_10, window_bounds = array<i64: 32, 64>}, {pipeline_mode = #tpu.pipeline_mode<synchronous>, transform_indices = @transform_11, window_bounds = array<i64: 1, 64>}, {pipeline_mode = #tpu.pipeline_mode<synchronous>, transform_indices = @transform_12, window_bounds = array<i64: 64, 32>}, {pipeline_mode = #tpu.pipeline_mode<synchronous>, transform_indices = @transform_13, window_bounds = array<i64: 1, 32>}, {transform_indices = @transform_14, window_bounds = array<i64: 1, 8, 32>}, {transform_indices = @transform_15, window_bounds = array<i64: 1, 4, 8, 8>}, {transform_indices = @transform_16, window_bounds = array<i64: 1, 4, 8, 16>}]} {
    %c0 = arith.constant 0 : index
    %c0_0 = arith.constant 0 : index
    %c0_1 = arith.constant 0 : index
    %0 = vector.load %arg1[%c0, %c0_0, %c0_1] : memref<1x8x32xf32, #tpu.memory_space<vmem>>, vector<1x8x32xf32>
    %1 = vector.shape_cast %0 : vector<1x8x32xf32> to vector<8x32xf32>
    %c0_2 = arith.constant 0 : index
    %c0_3 = arith.constant 0 : index
    %c0_4 = arith.constant 0 : index
    %2 = vector.load %arg2[%c0_2, %c0_3, %c0_4] : memref<1x16x32xf32, #tpu.memory_space<vmem>>, vector<1x16x32xf32>
    %3 = vector.shape_cast %2 : vector<1x16x32xf32> to vector<16x32xf32>
    %c0_5 = arith.constant 0 : index
    %c0_6 = arith.constant 0 : index
    %c0_7 = arith.constant 0 : index
    %4 = vector.load %arg3[%c0_5, %c0_6, %c0_7] : memref<4x32x8xf32, #tpu.memory_space<vmem>>, vector<1x32x8xf32>
    %5 = vector.shape_cast %4 : vector<1x32x8xf32> to vector<32x8xf32>
    %cst = arith.constant dense<0.000000e+00> : vector<8x8xf32>
    %6 = tpu.matmul %1, %5, %cst {dimension_numbers = #tpu.dot_dimension_numbers<[1], [0], [0], [1], [0, 0, 1, 1], [], []>} : vector<8x32xf32>, vector<32x8xf32>, vector<8x8xf32> -> vector<8x8xf32>
    %c0_8 = arith.constant 0 : index
    %c0_9 = arith.constant 0 : index
    %c0_10 = arith.constant 0 : index
    %7 = vector.load %arg4[%c0_8, %c0_9, %c0_10] : memref<4x32x8xf32, #tpu.memory_space<vmem>>, vector<1x32x8xf32>
    %8 = vector.shape_cast %7 : vector<1x32x8xf32> to vector<32x8xf32>
    %cst_11 = arith.constant dense<0.000000e+00> : vector<8x8xf32>
    %9 = tpu.matmul %1, %8, %cst_11 {dimension_numbers = #tpu.dot_dimension_numbers<[1], [0], [0], [1], [0, 0, 1, 1], [], []>} : vector<8x32xf32>, vector<32x8xf32>, vector<8x8xf32> -> vector<8x8xf32>
    %c0_12 = arith.constant 0 : index
    %c0_13 = arith.constant 0 : index
    %c0_14 = arith.constant 0 : index
    %10 = vector.load %arg5[%c0_12, %c0_13, %c0_14] : memref<4x32x8xf32, #tpu.memory_space<vmem>>, vector<1x32x8xf32>
    %11 = vector.shape_cast %10 : vector<1x32x8xf32> to vector<32x8xf32>
    %cst_15 = arith.constant dense<0.000000e+00> : vector<8x8xf32>
    %12 = tpu.matmul %1, %11, %cst_15 {dimension_numbers = #tpu.dot_dimension_numbers<[1], [0], [0], [1], [0, 0, 1, 1], [], []>} : vector<8x32xf32>, vector<32x8xf32>, vector<8x8xf32> -> vector<8x8xf32>
    %cst_16 = arith.constant dense<0.000000e+00> : vector<8x8xf32>
    %13 = tpu.matmul %6, %9, %cst_16 {dimension_numbers = #tpu.dot_dimension_numbers<[1], [1], [0], [0], [0, 0, 1, 0], [], []>} : vector<8x8xf32>, vector<8x8xf32>, vector<8x8xf32> -> vector<8x8xf32>
    %cst_17 = arith.constant dense<0xFF800000> : vector<8xf32>
    %14 = vector.multi_reduction <maximumf>, %13, %cst_17 [1] : vector<8x8xf32> to vector<8xf32>
    %15 = vector.shape_cast %14 : vector<8xf32> to vector<8x1xf32>
    %16 = vector.broadcast %15 : vector<8x1xf32> to vector<8x8xf32>
    %17 = arith.subf %13, %16 : vector<8x8xf32>
    %18 = math.exp %17 : vector<8x8xf32>
    %cst_18 = arith.constant dense<0.000000e+00> : vector<8xf32>
    %19 = vector.multi_reduction <add>, %18, %cst_18 [1] : vector<8x8xf32> to vector<8xf32>
    %20 = vector.shape_cast %19 : vector<8xf32> to vector<8x1xf32>
    %21 = tpu.reciprocal %20 {approx = true} : vector<8x1xf32> -> vector<8x1xf32>
    %22 = vector.broadcast %21 : vector<8x1xf32> to vector<8x8xf32>
    %23 = arith.mulf %18, %22 : vector<8x8xf32>
    %c0_19 = arith.constant 0 : index
    %c0_20 = arith.constant 0 : index
    %c0_21 = arith.constant 0 : index
    %c0_22 = arith.constant 0 : index
    %24 = vector.load %arg16[%c0_19, %c0_20, %c0_21, %c0_22] : memref<1x4x8x8xf32, #tpu.memory_space<vmem>>, vector<1x1x8x8xf32>
    %25 = vector.shape_cast %24 : vector<1x1x8x8xf32> to vector<8x8xf32>
    %26 = vector.shape_cast %23 : vector<8x8xf32> to vector<1x1x8x8xf32>
    tpu.vector_store %arg16[%c0_19, %c0_20, %c0_21, %c0_22], %26 {strides = array<i32>} : memref<1x4x8x8xf32, #tpu.memory_space<vmem>>, vector<1x1x8x8xf32>,
    %cst_23 = arith.constant dense<0.000000e+00> : vector<8x8xf32>
    %27 = tpu.matmul %23, %12, %cst_23 {dimension_numbers = #tpu.dot_dimension_numbers<[1], [0], [0], [1], [0, 0, 1, 1], [], []>} : vector<8x8xf32>, vector<8x8xf32>, vector<8x8xf32> -> vector<8x8xf32>
    %c0_24 = arith.constant 0 : index
    %c0_25 = arith.constant 0 : index
    %c0_26 = arith.constant 0 : index
    %28 = vector.load %arg6[%c0_24, %c0_25, %c0_26] : memref<4x8x32xf32, #tpu.memory_space<vmem>>, vector<1x8x32xf32>
    %29 = vector.shape_cast %28 : vector<1x8x32xf32> to vector<8x32xf32>
    %cst_27 = arith.constant dense<0.000000e+00> : vector<8x32xf32>
    %30 = tpu.matmul %27, %29, %cst_27 {dimension_numbers = #tpu.dot_dimension_numbers<[1], [0], [0], [1], [0, 0, 1, 1], [], []>} : vector<8x8xf32>, vector<8x32xf32>, vector<8x32xf32> -> vector<8x32xf32>
    %31 = arith.addf %1, %30 : vector<8x32xf32>
    %c1 = arith.constant 1 : index
    %c0_28 = arith.constant 0 : index
    %c0_29 = arith.constant 0 : index
    %32 = vector.load %arg3[%c1, %c0_28, %c0_29] : memref<4x32x8xf32, #tpu.memory_space<vmem>>, vector<1x32x8xf32>
    %33 = vector.shape_cast %32 : vector<1x32x8xf32> to vector<32x8xf32>
    %cst_30 = arith.constant dense<0.000000e+00> : vector<8x8xf32>
    %34 = tpu.matmul %1, %33, %cst_30 {dimension_numbers = #tpu.dot_dimension_numbers<[1], [0], [0], [1], [0, 0, 1, 1], [], []>} : vector<8x32xf32>, vector<32x8xf32>, vector<8x8xf32> -> vector<8x8xf32>
    %c1_31 = arith.constant 1 : index
    %c0_32 = arith.constant 0 : index
    %c0_33 = arith.constant 0 : index
    %35 = vector.load %arg4[%c1_31, %c0_32, %c0_33] : memref<4x32x8xf32, #tpu.memory_space<vmem>>, vector<1x32x8xf32>
    %36 = vector.shape_cast %35 : vector<1x32x8xf32> to vector<32x8xf32>
    %cst_34 = arith.constant dense<0.000000e+00> : vector<8x8xf32>
    %37 = tpu.matmul %1, %36, %cst_34 {dimension_numbers = #tpu.dot_dimension_numbers<[1], [0], [0], [1], [0, 0, 1, 1], [], []>} : vector<8x32xf32>, vector<32x8xf32>, vector<8x8xf32> -> vector<8x8xf32>
    %c1_35 = arith.constant 1 : index
    %c0_36 = arith.constant 0 : index
    %c0_37 = arith.constant 0 : index
    %38 = vector.load %arg5[%c1_35, %c0_36, %c0_37] : memref<4x32x8xf32, #tpu.memory_space<vmem>>, vector<1x32x8xf32>
    %39 = vector.shape_cast %38 : vector<1x32x8xf32> to vector<32x8xf32>
    %cst_38 = arith.constant dense<0.000000e+00> : vector<8x8xf32>
    %40 = tpu.matmul %1, %39, %cst_38 {dimension_numbers = #tpu.dot_dimension_numbers<[1], [0], [0], [1], [0, 0, 1, 1], [], []>} : vector<8x32xf32>, vector<32x8xf32>, vector<8x8xf32> -> vector<8x8xf32>
    %cst_39 = arith.constant dense<0.000000e+00> : vector<8x8xf32>
    %41 = tpu.matmul %34, %37, %cst_39 {dimension_numbers = #tpu.dot_dimension_numbers<[1], [1], [0], [0], [0, 0, 1, 0], [], []>} : vector<8x8xf32>, vector<8x8xf32>, vector<8x8xf32> -> vector<8x8xf32>
    %cst_40 = arith.constant dense<0xFF800000> : vector<8xf32>
    %42 = vector.multi_reduction <maximumf>, %41, %cst_40 [1] : vector<8x8xf32> to vector<8xf32>
    %43 = vector.shape_cast %42 : vector<8xf32> to vector<8x1xf32>
    %44 = vector.broadcast %43 : vector<8x1xf32> to vector<8x8xf32>
    %45 = arith.subf %41, %44 : vector<8x8xf32>
    %46 = math.exp %45 : vector<8x8xf32>
    %cst_41 = arith.constant dense<0.000000e+00> : vector<8xf32>
    %47 = vector.multi_reduction <add>, %46, %cst_41 [1] : vector<8x8xf32> to vector<8xf32>
    %48 = vector.shape_cast %47 : vector<8xf32> to vector<8x1xf32>
    %49 = tpu.reciprocal %48 {approx = true} : vector<8x1xf32> -> vector<8x1xf32>
    %50 = vector.broadcast %49 : vector<8x1xf32> to vector<8x8xf32>
    %51 = arith.mulf %46, %50 : vector<8x8xf32>
    %c0_42 = arith.constant 0 : index
    %c1_43 = arith.constant 1 : index
    %c0_44 = arith.constant 0 : index
    %c0_45 = arith.constant 0 : index
    %52 = vector.load %arg16[%c0_42, %c1_43, %c0_44, %c0_45] : memref<1x4x8x8xf32, #tpu.memory_space<vmem>>, vector<1x1x8x8xf32>
    %53 = vector.shape_cast %52 : vector<1x1x8x8xf32> to vector<8x8xf32>
    %54 = vector.shape_cast %51 : vector<8x8xf32> to vector<1x1x8x8xf32>
    tpu.vector_store %arg16[%c0_42, %c1_43, %c0_44, %c0_45], %54 {strides = array<i32>} : memref<1x4x8x8xf32, #tpu.memory_space<vmem>>, vector<1x1x8x8xf32>,
    %cst_46 = arith.constant dense<0.000000e+00> : vector<8x8xf32>
    %55 = tpu.matmul %51, %40, %cst_46 {dimension_numbers = #tpu.dot_dimension_numbers<[1], [0], [0], [1], [0, 0, 1, 1], [], []>} : vector<8x8xf32>, vector<8x8xf32>, vector<8x8xf32> -> vector<8x8xf32>
    %c1_47 = arith.constant 1 : index
    %c0_48 = arith.constant 0 : index
    %c0_49 = arith.constant 0 : index
    %56 = vector.load %arg6[%c1_47, %c0_48, %c0_49] : memref<4x8x32xf32, #tpu.memory_space<vmem>>, vector<1x8x32xf32>
    %57 = vector.shape_cast %56 : vector<1x8x32xf32> to vector<8x32xf32>
    %cst_50 = arith.constant dense<0.000000e+00> : vector<8x32xf32>
    %58 = tpu.matmul %55, %57, %cst_50 {dimension_numbers = #tpu.dot_dimension_numbers<[1], [0], [0], [1], [0, 0, 1, 1], [], []>} : vector<8x8xf32>, vector<8x32xf32>, vector<8x32xf32> -> vector<8x32xf32>
    %59 = arith.addf %31, %58 : vector<8x32xf32>
    %c2 = arith.constant 2 : index
    %c0_51 = arith.constant 0 : index
    %c0_52 = arith.constant 0 : index
    %60 = vector.load %arg3[%c2, %c0_51, %c0_52] : memref<4x32x8xf32, #tpu.memory_space<vmem>>, vector<1x32x8xf32>
    %61 = vector.shape_cast %60 : vector<1x32x8xf32> to vector<32x8xf32>
    %cst_53 = arith.constant dense<0.000000e+00> : vector<8x8xf32>
    %62 = tpu.matmul %1, %61, %cst_53 {dimension_numbers = #tpu.dot_dimension_numbers<[1], [0], [0], [1], [0, 0, 1, 1], [], []>} : vector<8x32xf32>, vector<32x8xf32>, vector<8x8xf32> -> vector<8x8xf32>
    %c2_54 = arith.constant 2 : index
    %c0_55 = arith.constant 0 : index
    %c0_56 = arith.constant 0 : index
    %63 = vector.load %arg4[%c2_54, %c0_55, %c0_56] : memref<4x32x8xf32, #tpu.memory_space<vmem>>, vector<1x32x8xf32>
    %64 = vector.shape_cast %63 : vector<1x32x8xf32> to vector<32x8xf32>
    %cst_57 = arith.constant dense<0.000000e+00> : vector<8x8xf32>
    %65 = tpu.matmul %1, %64, %cst_57 {dimension_numbers = #tpu.dot_dimension_numbers<[1], [0], [0], [1], [0, 0, 1, 1], [], []>} : vector<8x32xf32>, vector<32x8xf32>, vector<8x8xf32> -> vector<8x8xf32>
    %c2_58 = arith.constant 2 : index
    %c0_59 = arith.constant 0 : index
    %c0_60 = arith.constant 0 : index
    %66 = vector.load %arg5[%c2_58, %c0_59, %c0_60] : memref<4x32x8xf32, #tpu.memory_space<vmem>>, vector<1x32x8xf32>
    %67 = vector.shape_cast %66 : vector<1x32x8xf32> to vector<32x8xf32>
    %cst_61 = arith.constant dense<0.000000e+00> : vector<8x8xf32>
    %68 = tpu.matmul %1, %67, %cst_61 {dimension_numbers = #tpu.dot_dimension_numbers<[1], [0], [0], [1], [0, 0, 1, 1], [], []>} : vector<8x32xf32>, vector<32x8xf32>, vector<8x8xf32> -> vector<8x8xf32>
    %cst_62 = arith.constant dense<0.000000e+00> : vector<8x8xf32>
    %69 = tpu.matmul %62, %65, %cst_62 {dimension_numbers = #tpu.dot_dimension_numbers<[1], [1], [0], [0], [0, 0, 1, 0], [], []>} : vector<8x8xf32>, vector<8x8xf32>, vector<8x8xf32> -> vector<8x8xf32>
    %cst_63 = arith.constant dense<0xFF800000> : vector<8xf32>
    %70 = vector.multi_reduction <maximumf>, %69, %cst_63 [1] : vector<8x8xf32> to vector<8xf32>
    %71 = vector.shape_cast %70 : vector<8xf32> to vector<8x1xf32>
    %72 = vector.broadcast %71 : vector<8x1xf32> to vector<8x8xf32>
    %73 = arith.subf %69, %72 : vector<8x8xf32>
    %74 = math.exp %73 : vector<8x8xf32>
    %cst_64 = arith.constant dense<0.000000e+00> : vector<8xf32>
    %75 = vector.multi_reduction <add>, %74, %cst_64 [1] : vector<8x8xf32> to vector<8xf32>
    %76 = vector.shape_cast %75 : vector<8xf32> to vector<8x1xf32>
    %77 = tpu.reciprocal %76 {approx = true} : vector<8x1xf32> -> vector<8x1xf32>
    %78 = vector.broadcast %77 : vector<8x1xf32> to vector<8x8xf32>
    %79 = arith.mulf %74, %78 : vector<8x8xf32>
    %c0_65 = arith.constant 0 : index
    %c2_66 = arith.constant 2 : index
    %c0_67 = arith.constant 0 : index
    %c0_68 = arith.constant 0 : index
    %80 = vector.load %arg16[%c0_65, %c2_66, %c0_67, %c0_68] : memref<1x4x8x8xf32, #tpu.memory_space<vmem>>, vector<1x1x8x8xf32>
    %81 = vector.shape_cast %80 : vector<1x1x8x8xf32> to vector<8x8xf32>
    %82 = vector.shape_cast %79 : vector<8x8xf32> to vector<1x1x8x8xf32>
    tpu.vector_store %arg16[%c0_65, %c2_66, %c0_67, %c0_68], %82 {strides = array<i32>} : memref<1x4x8x8xf32, #tpu.memory_space<vmem>>, vector<1x1x8x8xf32>,
    %cst_69 = arith.constant dense<0.000000e+00> : vector<8x8xf32>
    %83 = tpu.matmul %79, %68, %cst_69 {dimension_numbers = #tpu.dot_dimension_numbers<[1], [0], [0], [1], [0, 0, 1, 1], [], []>} : vector<8x8xf32>, vector<8x8xf32>, vector<8x8xf32> -> vector<8x8xf32>
    %c2_70 = arith.constant 2 : index
    %c0_71 = arith.constant 0 : index
    %c0_72 = arith.constant 0 : index
    %84 = vector.load %arg6[%c2_70, %c0_71, %c0_72] : memref<4x8x32xf32, #tpu.memory_space<vmem>>, vector<1x8x32xf32>
    %85 = vector.shape_cast %84 : vector<1x8x32xf32> to vector<8x32xf32>
    %cst_73 = arith.constant dense<0.000000e+00> : vector<8x32xf32>
    %86 = tpu.matmul %83, %85, %cst_73 {dimension_numbers = #tpu.dot_dimension_numbers<[1], [0], [0], [1], [0, 0, 1, 1], [], []>} : vector<8x8xf32>, vector<8x32xf32>, vector<8x32xf32> -> vector<8x32xf32>
    %87 = arith.addf %59, %86 : vector<8x32xf32>
    %c3 = arith.constant 3 : index
    %c0_74 = arith.constant 0 : index
    %c0_75 = arith.constant 0 : index
    %88 = vector.load %arg3[%c3, %c0_74, %c0_75] : memref<4x32x8xf32, #tpu.memory_space<vmem>>, vector<1x32x8xf32>
    %89 = vector.shape_cast %88 : vector<1x32x8xf32> to vector<32x8xf32>
    %cst_76 = arith.constant dense<0.000000e+00> : vector<8x8xf32>
    %90 = tpu.matmul %1, %89, %cst_76 {dimension_numbers = #tpu.dot_dimension_numbers<[1], [0], [0], [1], [0, 0, 1, 1], [], []>} : vector<8x32xf32>, vector<32x8xf32>, vector<8x8xf32> -> vector<8x8xf32>
    %c3_77 = arith.constant 3 : index
    %c0_78 = arith.constant 0 : index
    %c0_79 = arith.constant 0 : index
    %91 = vector.load %arg4[%c3_77, %c0_78, %c0_79] : memref<4x32x8xf32, #tpu.memory_space<vmem>>, vector<1x32x8xf32>
    %92 = vector.shape_cast %91 : vector<1x32x8xf32> to vector<32x8xf32>
    %cst_80 = arith.constant dense<0.000000e+00> : vector<8x8xf32>
    %93 = tpu.matmul %1, %92, %cst_80 {dimension_numbers = #tpu.dot_dimension_numbers<[1], [0], [0], [1], [0, 0, 1, 1], [], []>} : vector<8x32xf32>, vector<32x8xf32>, vector<8x8xf32> -> vector<8x8xf32>
    %c3_81 = arith.constant 3 : index
    %c0_82 = arith.constant 0 : index
    %c0_83 = arith.constant 0 : index
    %94 = vector.load %arg5[%c3_81, %c0_82, %c0_83] : memref<4x32x8xf32, #tpu.memory_space<vmem>>, vector<1x32x8xf32>
    %95 = vector.shape_cast %94 : vector<1x32x8xf32> to vector<32x8xf32>
    %cst_84 = arith.constant dense<0.000000e+00> : vector<8x8xf32>
    %96 = tpu.matmul %1, %95, %cst_84 {dimension_numbers = #tpu.dot_dimension_numbers<[1], [0], [0], [1], [0, 0, 1, 1], [], []>} : vector<8x32xf32>, vector<32x8xf32>, vector<8x8xf32> -> vector<8x8xf32>
    %cst_85 = arith.constant dense<0.000000e+00> : vector<8x8xf32>
    %97 = tpu.matmul %90, %93, %cst_85 {dimension_numbers = #tpu.dot_dimension_numbers<[1], [1], [0], [0], [0, 0, 1, 0], [], []>} : vector<8x8xf32>, vector<8x8xf32>, vector<8x8xf32> -> vector<8x8xf32>
    %cst_86 = arith.constant dense<0xFF800000> : vector<8xf32>
    %98 = vector.multi_reduction <maximumf>, %97, %cst_86 [1] : vector<8x8xf32> to vector<8xf32>
    %99 = vector.shape_cast %98 : vector<8xf32> to vector<8x1xf32>
    %100 = vector.broadcast %99 : vector<8x1xf32> to vector<8x8xf32>
    %101 = arith.subf %97, %100 : vector<8x8xf32>
    %102 = math.exp %101 : vector<8x8xf32>
    %cst_87 = arith.constant dense<0.000000e+00> : vector<8xf32>
    %103 = vector.multi_reduction <add>, %102, %cst_87 [1] : vector<8x8xf32> to vector<8xf32>
    %104 = vector.shape_cast %103 : vector<8xf32> to vector<8x1xf32>
    %105 = tpu.reciprocal %104 {approx = true} : vector<8x1xf32> -> vector<8x1xf32>
    %106 = vector.broadcast %105 : vector<8x1xf32> to vector<8x8xf32>
    %107 = arith.mulf %102, %106 : vector<8x8xf32>
    %c0_88 = arith.constant 0 : index
    %c3_89 = arith.constant 3 : index
    %c0_90 = arith.constant 0 : index
    %c0_91 = arith.constant 0 : index
    %108 = vector.load %arg16[%c0_88, %c3_89, %c0_90, %c0_91] : memref<1x4x8x8xf32, #tpu.memory_space<vmem>>, vector<1x1x8x8xf32>
    %109 = vector.shape_cast %108 : vector<1x1x8x8xf32> to vector<8x8xf32>
    %110 = vector.shape_cast %107 : vector<8x8xf32> to vector<1x1x8x8xf32>
    tpu.vector_store %arg16[%c0_88, %c3_89, %c0_90, %c0_91], %110 {strides = array<i32>} : memref<1x4x8x8xf32, #tpu.memory_space<vmem>>, vector<1x1x8x8xf32>,
    %cst_92 = arith.constant dense<0.000000e+00> : vector<8x8xf32>
    %111 = tpu.matmul %107, %96, %cst_92 {dimension_numbers = #tpu.dot_dimension_numbers<[1], [0], [0], [1], [0, 0, 1, 1], [], []>} : vector<8x8xf32>, vector<8x8xf32>, vector<8x8xf32> -> vector<8x8xf32>
    %c3_93 = arith.constant 3 : index
    %c0_94 = arith.constant 0 : index
    %c0_95 = arith.constant 0 : index
    %112 = vector.load %arg6[%c3_93, %c0_94, %c0_95] : memref<4x8x32xf32, #tpu.memory_space<vmem>>, vector<1x8x32xf32>
    %113 = vector.shape_cast %112 : vector<1x8x32xf32> to vector<8x32xf32>
    %cst_96 = arith.constant dense<0.000000e+00> : vector<8x32xf32>
    %114 = tpu.matmul %111, %113, %cst_96 {dimension_numbers = #tpu.dot_dimension_numbers<[1], [0], [0], [1], [0, 0, 1, 1], [], []>} : vector<8x8xf32>, vector<8x32xf32>, vector<8x32xf32> -> vector<8x32xf32>
    %115 = arith.addf %87, %114 : vector<8x32xf32>
    %c0_97 = arith.constant 0 : index
    %c0_98 = arith.constant 0 : index
    %c0_99 = arith.constant 0 : index
    %116 = vector.load %arg7[%c0_97, %c0_98, %c0_99] : memref<4x32x8xf32, #tpu.memory_space<vmem>>, vector<1x32x8xf32>
    %117 = vector.shape_cast %116 : vector<1x32x8xf32> to vector<32x8xf32>
    %cst_100 = arith.constant dense<0.000000e+00> : vector<8x8xf32>
    %118 = tpu.matmul %115, %117, %cst_100 {dimension_numbers = #tpu.dot_dimension_numbers<[1], [0], [0], [1], [0, 0, 1, 1], [], []>} : vector<8x32xf32>, vector<32x8xf32>, vector<8x8xf32> -> vector<8x8xf32>
    %c0_101 = arith.constant 0 : index
    %c0_102 = arith.constant 0 : index
    %c0_103 = arith.constant 0 : index
    %119 = vector.load %arg8[%c0_101, %c0_102, %c0_103] : memref<4x32x8xf32, #tpu.memory_space<vmem>>, vector<1x32x8xf32>
    %120 = vector.shape_cast %119 : vector<1x32x8xf32> to vector<32x8xf32>
    %cst_104 = arith.constant dense<0.000000e+00> : vector<16x8xf32>
    %121 = tpu.matmul %3, %120, %cst_104 {dimension_numbers = #tpu.dot_dimension_numbers<[1], [0], [0], [1], [0, 0, 1, 1], [], []>} : vector<16x32xf32>, vector<32x8xf32>, vector<16x8xf32> -> vector<16x8xf32>
    %c0_105 = arith.constant 0 : index
    %c0_106 = arith.constant 0 : index
    %c0_107 = arith.constant 0 : index
    %122 = vector.load %arg9[%c0_105, %c0_106, %c0_107] : memref<4x32x8xf32, #tpu.memory_space<vmem>>, vector<1x32x8xf32>
    %123 = vector.shape_cast %122 : vector<1x32x8xf32> to vector<32x8xf32>
    %cst_108 = arith.constant dense<0.000000e+00> : vector<16x8xf32>
    %124 = tpu.matmul %3, %123, %cst_108 {dimension_numbers = #tpu.dot_dimension_numbers<[1], [0], [0], [1], [0, 0, 1, 1], [], []>} : vector<16x32xf32>, vector<32x8xf32>, vector<16x8xf32> -> vector<16x8xf32>
    %cst_109 = arith.constant dense<0.000000e+00> : vector<8x16xf32>
    %125 = tpu.matmul %118, %121, %cst_109 {dimension_numbers = #tpu.dot_dimension_numbers<[1], [1], [0], [0], [0, 0, 1, 0], [], []>} : vector<8x8xf32>, vector<16x8xf32>, vector<8x16xf32> -> vector<8x16xf32>
    %cst_110 = arith.constant dense<0xFF800000> : vector<8xf32>
    %126 = vector.multi_reduction <maximumf>, %125, %cst_110 [1] : vector<8x16xf32> to vector<8xf32>
    %127 = vector.shape_cast %126 : vector<8xf32> to vector<8x1xf32>
    %128 = vector.broadcast %127 : vector<8x1xf32> to vector<8x16xf32>
    %129 = arith.subf %125, %128 : vector<8x16xf32>
    %130 = math.exp %129 : vector<8x16xf32>
    %cst_111 = arith.constant dense<0.000000e+00> : vector<8xf32>
    %131 = vector.multi_reduction <add>, %130, %cst_111 [1] : vector<8x16xf32> to vector<8xf32>
    %132 = vector.shape_cast %131 : vector<8xf32> to vector<8x1xf32>
    %133 = tpu.reciprocal %132 {approx = true} : vector<8x1xf32> -> vector<8x1xf32>
    %134 = vector.broadcast %133 : vector<8x1xf32> to vector<8x16xf32>
    %135 = arith.mulf %130, %134 : vector<8x16xf32>
    %c0_112 = arith.constant 0 : index
    %c0_113 = arith.constant 0 : index
    %c0_114 = arith.constant 0 : index
    %c0_115 = arith.constant 0 : index
    %136 = vector.load %arg17[%c0_112, %c0_113, %c0_114, %c0_115] : memref<1x4x8x16xf32, #tpu.memory_space<vmem>>, vector<1x1x8x16xf32>
    %137 = vector.shape_cast %136 : vector<1x1x8x16xf32> to vector<8x16xf32>
    %138 = vector.shape_cast %135 : vector<8x16xf32> to vector<1x1x8x16xf32>
    tpu.vector_store %arg17[%c0_112, %c0_113, %c0_114, %c0_115], %138 {strides = array<i32>} : memref<1x4x8x16xf32, #tpu.memory_space<vmem>>, vector<1x1x8x16xf32>,
    %cst_116 = arith.constant dense<0.000000e+00> : vector<8x8xf32>
    %139 = tpu.matmul %135, %124, %cst_116 {dimension_numbers = #tpu.dot_dimension_numbers<[1], [0], [0], [1], [0, 0, 1, 1], [], []>} : vector<8x16xf32>, vector<16x8xf32>, vector<8x8xf32> -> vector<8x8xf32>
    %c0_117 = arith.constant 0 : index
    %c0_118 = arith.constant 0 : index
    %c0_119 = arith.constant 0 : index
    %140 = vector.load %arg10[%c0_117, %c0_118, %c0_119] : memref<4x8x32xf32, #tpu.memory_space<vmem>>, vector<1x8x32xf32>
    %141 = vector.shape_cast %140 : vector<1x8x32xf32> to vector<8x32xf32>
    %cst_120 = arith.constant dense<0.000000e+00> : vector<8x32xf32>
    %142 = tpu.matmul %139, %141, %cst_120 {dimension_numbers = #tpu.dot_dimension_numbers<[1], [0], [0], [1], [0, 0, 1, 1], [], []>} : vector<8x8xf32>, vector<8x32xf32>, vector<8x32xf32> -> vector<8x32xf32>
    %143 = arith.addf %115, %142 : vector<8x32xf32>
    %c1_121 = arith.constant 1 : index
    %c0_122 = arith.constant 0 : index
    %c0_123 = arith.constant 0 : index
    %144 = vector.load %arg7[%c1_121, %c0_122, %c0_123] : memref<4x32x8xf32, #tpu.memory_space<vmem>>, vector<1x32x8xf32>
    %145 = vector.shape_cast %144 : vector<1x32x8xf32> to vector<32x8xf32>
    %cst_124 = arith.constant dense<0.000000e+00> : vector<8x8xf32>
    %146 = tpu.matmul %115, %145, %cst_124 {dimension_numbers = #tpu.dot_dimension_numbers<[1], [0], [0], [1], [0, 0, 1, 1], [], []>} : vector<8x32xf32>, vector<32x8xf32>, vector<8x8xf32> -> vector<8x8xf32>
    %c1_125 = arith.constant 1 : index
    %c0_126 = arith.constant 0 : index
    %c0_127 = arith.constant 0 : index
    %147 = vector.load %arg8[%c1_125, %c0_126, %c0_127] : memref<4x32x8xf32, #tpu.memory_space<vmem>>, vector<1x32x8xf32>
    %148 = vector.shape_cast %147 : vector<1x32x8xf32> to vector<32x8xf32>
    %cst_128 = arith.constant dense<0.000000e+00> : vector<16x8xf32>
    %149 = tpu.matmul %3, %148, %cst_128 {dimension_numbers = #tpu.dot_dimension_numbers<[1], [0], [0], [1], [0, 0, 1, 1], [], []>} : vector<16x32xf32>, vector<32x8xf32>, vector<16x8xf32> -> vector<16x8xf32>
    %c1_129 = arith.constant 1 : index
    %c0_130 = arith.constant 0 : index
    %c0_131 = arith.constant 0 : index
    %150 = vector.load %arg9[%c1_129, %c0_130, %c0_131] : memref<4x32x8xf32, #tpu.memory_space<vmem>>, vector<1x32x8xf32>
    %151 = vector.shape_cast %150 : vector<1x32x8xf32> to vector<32x8xf32>
    %cst_132 = arith.constant dense<0.000000e+00> : vector<16x8xf32>
    %152 = tpu.matmul %3, %151, %cst_132 {dimension_numbers = #tpu.dot_dimension_numbers<[1], [0], [0], [1], [0, 0, 1, 1], [], []>} : vector<16x32xf32>, vector<32x8xf32>, vector<16x8xf32> -> vector<16x8xf32>
    %cst_133 = arith.constant dense<0.000000e+00> : vector<8x16xf32>
    %153 = tpu.matmul %146, %149, %cst_133 {dimension_numbers = #tpu.dot_dimension_numbers<[1], [1], [0], [0], [0, 0, 1, 0], [], []>} : vector<8x8xf32>, vector<16x8xf32>, vector<8x16xf32> -> vector<8x16xf32>
    %cst_134 = arith.constant dense<0xFF800000> : vector<8xf32>
    %154 = vector.multi_reduction <maximumf>, %153, %cst_134 [1] : vector<8x16xf32> to vector<8xf32>
    %155 = vector.shape_cast %154 : vector<8xf32> to vector<8x1xf32>
    %156 = vector.broadcast %155 : vector<8x1xf32> to vector<8x16xf32>
    %157 = arith.subf %153, %156 : vector<8x16xf32>
    %158 = math.exp %157 : vector<8x16xf32>
    %cst_135 = arith.constant dense<0.000000e+00> : vector<8xf32>
    %159 = vector.multi_reduction <add>, %158, %cst_135 [1] : vector<8x16xf32> to vector<8xf32>
    %160 = vector.shape_cast %159 : vector<8xf32> to vector<8x1xf32>
    %161 = tpu.reciprocal %160 {approx = true} : vector<8x1xf32> -> vector<8x1xf32>
    %162 = vector.broadcast %161 : vector<8x1xf32> to vector<8x16xf32>
    %163 = arith.mulf %158, %162 : vector<8x16xf32>
    %c0_136 = arith.constant 0 : index
    %c1_137 = arith.constant 1 : index
    %c0_138 = arith.constant 0 : index
    %c0_139 = arith.constant 0 : index
    %164 = vector.load %arg17[%c0_136, %c1_137, %c0_138, %c0_139] : memref<1x4x8x16xf32, #tpu.memory_space<vmem>>, vector<1x1x8x16xf32>
    %165 = vector.shape_cast %164 : vector<1x1x8x16xf32> to vector<8x16xf32>
    %166 = vector.shape_cast %163 : vector<8x16xf32> to vector<1x1x8x16xf32>
    tpu.vector_store %arg17[%c0_136, %c1_137, %c0_138, %c0_139], %166 {strides = array<i32>} : memref<1x4x8x16xf32, #tpu.memory_space<vmem>>, vector<1x1x8x16xf32>,
    %cst_140 = arith.constant dense<0.000000e+00> : vector<8x8xf32>
    %167 = tpu.matmul %163, %152, %cst_140 {dimension_numbers = #tpu.dot_dimension_numbers<[1], [0], [0], [1], [0, 0, 1, 1], [], []>} : vector<8x16xf32>, vector<16x8xf32>, vector<8x8xf32> -> vector<8x8xf32>
    %c1_141 = arith.constant 1 : index
    %c0_142 = arith.constant 0 : index
    %c0_143 = arith.constant 0 : index
    %168 = vector.load %arg10[%c1_141, %c0_142, %c0_143] : memref<4x8x32xf32, #tpu.memory_space<vmem>>, vector<1x8x32xf32>
    %169 = vector.shape_cast %168 : vector<1x8x32xf32> to vector<8x32xf32>
    %cst_144 = arith.constant dense<0.000000e+00> : vector<8x32xf32>
    %170 = tpu.matmul %167, %169, %cst_144 {dimension_numbers = #tpu.dot_dimension_numbers<[1], [0], [0], [1], [0, 0, 1, 1], [], []>} : vector<8x8xf32>, vector<8x32xf32>, vector<8x32xf32> -> vector<8x32xf32>
    %171 = arith.addf %143, %170 : vector<8x32xf32>
    %c2_145 = arith.constant 2 : index
    %c0_146 = arith.constant 0 : index
    %c0_147 = arith.constant 0 : index
    %172 = vector.load %arg7[%c2_145, %c0_146, %c0_147] : memref<4x32x8xf32, #tpu.memory_space<vmem>>, vector<1x32x8xf32>
    %173 = vector.shape_cast %172 : vector<1x32x8xf32> to vector<32x8xf32>
    %cst_148 = arith.constant dense<0.000000e+00> : vector<8x8xf32>
    %174 = tpu.matmul %115, %173, %cst_148 {dimension_numbers = #tpu.dot_dimension_numbers<[1], [0], [0], [1], [0, 0, 1, 1], [], []>} : vector<8x32xf32>, vector<32x8xf32>, vector<8x8xf32> -> vector<8x8xf32>
    %c2_149 = arith.constant 2 : index
    %c0_150 = arith.constant 0 : index
    %c0_151 = arith.constant 0 : index
    %175 = vector.load %arg8[%c2_149, %c0_150, %c0_151] : memref<4x32x8xf32, #tpu.memory_space<vmem>>, vector<1x32x8xf32>
    %176 = vector.shape_cast %175 : vector<1x32x8xf32> to vector<32x8xf32>
    %cst_152 = arith.constant dense<0.000000e+00> : vector<16x8xf32>
    %177 = tpu.matmul %3, %176, %cst_152 {dimension_numbers = #tpu.dot_dimension_numbers<[1], [0], [0], [1], [0, 0, 1, 1], [], []>} : vector<16x32xf32>, vector<32x8xf32>, vector<16x8xf32> -> vector<16x8xf32>
    %c2_153 = arith.constant 2 : index
    %c0_154 = arith.constant 0 : index
    %c0_155 = arith.constant 0 : index
    %178 = vector.load %arg9[%c2_153, %c0_154, %c0_155] : memref<4x32x8xf32, #tpu.memory_space<vmem>>, vector<1x32x8xf32>
    %179 = vector.shape_cast %178 : vector<1x32x8xf32> to vector<32x8xf32>
    %cst_156 = arith.constant dense<0.000000e+00> : vector<16x8xf32>
    %180 = tpu.matmul %3, %179, %cst_156 {dimension_numbers = #tpu.dot_dimension_numbers<[1], [0], [0], [1], [0, 0, 1, 1], [], []>} : vector<16x32xf32>, vector<32x8xf32>, vector<16x8xf32> -> vector<16x8xf32>
    %cst_157 = arith.constant dense<0.000000e+00> : vector<8x16xf32>
    %181 = tpu.matmul %174, %177, %cst_157 {dimension_numbers = #tpu.dot_dimension_numbers<[1], [1], [0], [0], [0, 0, 1, 0], [], []>} : vector<8x8xf32>, vector<16x8xf32>, vector<8x16xf32> -> vector<8x16xf32>
    %cst_158 = arith.constant dense<0xFF800000> : vector<8xf32>
    %182 = vector.multi_reduction <maximumf>, %181, %cst_158 [1] : vector<8x16xf32> to vector<8xf32>
    %183 = vector.shape_cast %182 : vector<8xf32> to vector<8x1xf32>
    %184 = vector.broadcast %183 : vector<8x1xf32> to vector<8x16xf32>
    %185 = arith.subf %181, %184 : vector<8x16xf32>
    %186 = math.exp %185 : vector<8x16xf32>
    %cst_159 = arith.constant dense<0.000000e+00> : vector<8xf32>
    %187 = vector.multi_reduction <add>, %186, %cst_159 [1] : vector<8x16xf32> to vector<8xf32>
    %188 = vector.shape_cast %187 : vector<8xf32> to vector<8x1xf32>
    %189 = tpu.reciprocal %188 {approx = true} : vector<8x1xf32> -> vector<8x1xf32>
    %190 = vector.broadcast %189 : vector<8x1xf32> to vector<8x16xf32>
    %191 = arith.mulf %186, %190 : vector<8x16xf32>
    %c0_160 = arith.constant 0 : index
    %c2_161 = arith.constant 2 : index
    %c0_162 = arith.constant 0 : index
    %c0_163 = arith.constant 0 : index
    %192 = vector.load %arg17[%c0_160, %c2_161, %c0_162, %c0_163] : memref<1x4x8x16xf32, #tpu.memory_space<vmem>>, vector<1x1x8x16xf32>
    %193 = vector.shape_cast %192 : vector<1x1x8x16xf32> to vector<8x16xf32>
    %194 = vector.shape_cast %191 : vector<8x16xf32> to vector<1x1x8x16xf32>
    tpu.vector_store %arg17[%c0_160, %c2_161, %c0_162, %c0_163], %194 {strides = array<i32>} : memref<1x4x8x16xf32, #tpu.memory_space<vmem>>, vector<1x1x8x16xf32>,
    %cst_164 = arith.constant dense<0.000000e+00> : vector<8x8xf32>
    %195 = tpu.matmul %191, %180, %cst_164 {dimension_numbers = #tpu.dot_dimension_numbers<[1], [0], [0], [1], [0, 0, 1, 1], [], []>} : vector<8x16xf32>, vector<16x8xf32>, vector<8x8xf32> -> vector<8x8xf32>
    %c2_165 = arith.constant 2 : index
    %c0_166 = arith.constant 0 : index
    %c0_167 = arith.constant 0 : index
    %196 = vector.load %arg10[%c2_165, %c0_166, %c0_167] : memref<4x8x32xf32, #tpu.memory_space<vmem>>, vector<1x8x32xf32>
    %197 = vector.shape_cast %196 : vector<1x8x32xf32> to vector<8x32xf32>
    %cst_168 = arith.constant dense<0.000000e+00> : vector<8x32xf32>
    %198 = tpu.matmul %195, %197, %cst_168 {dimension_numbers = #tpu.dot_dimension_numbers<[1], [0], [0], [1], [0, 0, 1, 1], [], []>} : vector<8x8xf32>, vector<8x32xf32>, vector<8x32xf32> -> vector<8x32xf32>
    %199 = arith.addf %171, %198 : vector<8x32xf32>
    %c3_169 = arith.constant 3 : index
    %c0_170 = arith.constant 0 : index
    %c0_171 = arith.constant 0 : index
    %200 = vector.load %arg7[%c3_169, %c0_170, %c0_171] : memref<4x32x8xf32, #tpu.memory_space<vmem>>, vector<1x32x8xf32>
    %201 = vector.shape_cast %200 : vector<1x32x8xf32> to vector<32x8xf32>
    %cst_172 = arith.constant dense<0.000000e+00> : vector<8x8xf32>
    %202 = tpu.matmul %115, %201, %cst_172 {dimension_numbers = #tpu.dot_dimension_numbers<[1], [0], [0], [1], [0, 0, 1, 1], [], []>} : vector<8x32xf32>, vector<32x8xf32>, vector<8x8xf32> -> vector<8x8xf32>
    %c3_173 = arith.constant 3 : index
    %c0_174 = arith.constant 0 : index
    %c0_175 = arith.constant 0 : index
    %203 = vector.load %arg8[%c3_173, %c0_174, %c0_175] : memref<4x32x8xf32, #tpu.memory_space<vmem>>, vector<1x32x8xf32>
    %204 = vector.shape_cast %203 : vector<1x32x8xf32> to vector<32x8xf32>
    %cst_176 = arith.constant dense<0.000000e+00> : vector<16x8xf32>
    %205 = tpu.matmul %3, %204, %cst_176 {dimension_numbers = #tpu.dot_dimension_numbers<[1], [0], [0], [1], [0, 0, 1, 1], [], []>} : vector<16x32xf32>, vector<32x8xf32>, vector<16x8xf32> -> vector<16x8xf32>
    %c3_177 = arith.constant 3 : index
    %c0_178 = arith.constant 0 : index
    %c0_179 = arith.constant 0 : index
    %206 = vector.load %arg9[%c3_177, %c0_178, %c0_179] : memref<4x32x8xf32, #tpu.memory_space<vmem>>, vector<1x32x8xf32>
    %207 = vector.shape_cast %206 : vector<1x32x8xf32> to vector<32x8xf32>
    %cst_180 = arith.constant dense<0.000000e+00> : vector<16x8xf32>
    %208 = tpu.matmul %3, %207, %cst_180 {dimension_numbers = #tpu.dot_dimension_numbers<[1], [0], [0], [1], [0, 0, 1, 1], [], []>} : vector<16x32xf32>, vector<32x8xf32>, vector<16x8xf32> -> vector<16x8xf32>
    %cst_181 = arith.constant dense<0.000000e+00> : vector<8x16xf32>
    %209 = tpu.matmul %202, %205, %cst_181 {dimension_numbers = #tpu.dot_dimension_numbers<[1], [1], [0], [0], [0, 0, 1, 0], [], []>} : vector<8x8xf32>, vector<16x8xf32>, vector<8x16xf32> -> vector<8x16xf32>
    %cst_182 = arith.constant dense<0xFF800000> : vector<8xf32>
    %210 = vector.multi_reduction <maximumf>, %209, %cst_182 [1] : vector<8x16xf32> to vector<8xf32>
    %211 = vector.shape_cast %210 : vector<8xf32> to vector<8x1xf32>
    %212 = vector.broadcast %211 : vector<8x1xf32> to vector<8x16xf32>
    %213 = arith.subf %209, %212 : vector<8x16xf32>
    %214 = math.exp %213 : vector<8x16xf32>
    %cst_183 = arith.constant dense<0.000000e+00> : vector<8xf32>
    %215 = vector.multi_reduction <add>, %214, %cst_183 [1] : vector<8x16xf32> to vector<8xf32>
    %216 = vector.shape_cast %215 : vector<8xf32> to vector<8x1xf32>
    %217 = tpu.reciprocal %216 {approx = true} : vector<8x1xf32> -> vector<8x1xf32>
    %218 = vector.broadcast %217 : vector<8x1xf32> to vector<8x16xf32>
    %219 = arith.mulf %214, %218 : vector<8x16xf32>
    %c0_184 = arith.constant 0 : index
    %c3_185 = arith.constant 3 : index
    %c0_186 = arith.constant 0 : index
    %c0_187 = arith.constant 0 : index
    %220 = vector.load %arg17[%c0_184, %c3_185, %c0_186, %c0_187] : memref<1x4x8x16xf32, #tpu.memory_space<vmem>>, vector<1x1x8x16xf32>
    %221 = vector.shape_cast %220 : vector<1x1x8x16xf32> to vector<8x16xf32>
    %222 = vector.shape_cast %219 : vector<8x16xf32> to vector<1x1x8x16xf32>
    tpu.vector_store %arg17[%c0_184, %c3_185, %c0_186, %c0_187], %222 {strides = array<i32>} : memref<1x4x8x16xf32, #tpu.memory_space<vmem>>, vector<1x1x8x16xf32>,
    %cst_188 = arith.constant dense<0.000000e+00> : vector<8x8xf32>
    %223 = tpu.matmul %219, %208, %cst_188 {dimension_numbers = #tpu.dot_dimension_numbers<[1], [0], [0], [1], [0, 0, 1, 1], [], []>} : vector<8x16xf32>, vector<16x8xf32>, vector<8x8xf32> -> vector<8x8xf32>
    %c3_189 = arith.constant 3 : index
    %c0_190 = arith.constant 0 : index
    %c0_191 = arith.constant 0 : index
    %224 = vector.load %arg10[%c3_189, %c0_190, %c0_191] : memref<4x8x32xf32, #tpu.memory_space<vmem>>, vector<1x8x32xf32>
    %225 = vector.shape_cast %224 : vector<1x8x32xf32> to vector<8x32xf32>
    %cst_192 = arith.constant dense<0.000000e+00> : vector<8x32xf32>
    %226 = tpu.matmul %223, %225, %cst_192 {dimension_numbers = #tpu.dot_dimension_numbers<[1], [0], [0], [1], [0, 0, 1, 1], [], []>} : vector<8x8xf32>, vector<8x32xf32>, vector<8x32xf32> -> vector<8x32xf32>
    %227 = arith.addf %199, %226 : vector<8x32xf32>
    %c0_193 = arith.constant 0 : index
    %c0_194 = arith.constant 0 : index
    %228 = vector.load %arg11[%c0_193, %c0_194] : memref<32x64xf32, #tpu.memory_space<vmem>>, vector<32x64xf32>
    %cst_195 = arith.constant dense<0.000000e+00> : vector<8x64xf32>
    %229 = tpu.matmul %227, %228, %cst_195 {dimension_numbers = #tpu.dot_dimension_numbers<[1], [0], [0], [1], [0, 0, 1, 1], [], []>} : vector<8x32xf32>, vector<32x64xf32>, vector<8x64xf32> -> vector<8x64xf32>
    %c0_196 = arith.constant 0 : index
    %c0_197 = arith.constant 0 : index
    %230 = vector.load %arg12[%c0_196, %c0_197] : memref<1x64xf32, #tpu.memory_space<vmem>>, vector<1x64xf32>
    %231 = vector.broadcast %230 : vector<1x64xf32> to vector<8x64xf32>
    %232 = arith.addf %229, %231 : vector<8x64xf32>
    %cst_198 = arith.constant 0.000000e+00 : f32
    %233 = vector.broadcast %cst_198 : f32 to vector<8x64xf32>
    %234 = arith.maximumf %232, %233 : vector<8x64xf32>
    %c0_199 = arith.constant 0 : index
    %c0_200 = arith.constant 0 : index
    %235 = vector.load %arg13[%c0_199, %c0_200] : memref<64x32xf32, #tpu.memory_space<vmem>>, vector<64x32xf32>
    %cst_201 = arith.constant dense<0.000000e+00> : vector<8x32xf32>
    %236 = tpu.matmul %234, %235, %cst_201 {dimension_numbers = #tpu.dot_dimension_numbers<[1], [0], [0], [1], [0, 0, 1, 1], [], []>} : vector<8x64xf32>, vector<64x32xf32>, vector<8x32xf32> -> vector<8x32xf32>
    %c0_202 = arith.constant 0 : index
    %c0_203 = arith.constant 0 : index
    %237 = vector.load %arg14[%c0_202, %c0_203] : memref<1x32xf32, #tpu.memory_space<vmem>>, vector<1x32xf32>
    %238 = vector.broadcast %237 : vector<1x32xf32> to vector<8x32xf32>
    %239 = arith.addf %236, %238 : vector<8x32xf32>
    %240 = arith.addf %239, %227 : vector<8x32xf32>
    %c0_204 = arith.constant 0 : index
    %c0_205 = arith.constant 0 : index
    %c0_206 = arith.constant 0 : index
    %241 = vector.load %arg15[%c0_204, %c0_205, %c0_206] : memref<1x8x32xf32, #tpu.memory_space<vmem>>, vector<1x8x32xf32>
    %242 = vector.shape_cast %241 : vector<1x8x32xf32> to vector<8x32xf32>
    %243 = vector.shape_cast %240 : vector<8x32xf32> to vector<1x8x32xf32>
    tpu.vector_store %arg15[%c0_204, %c0_205, %c0_206], %243 {strides = array<i32>} : memref<1x8x32xf32, #tpu.memory_space<vmem>>, vector<1x8x32xf32>,
    return
  }
  func.func @transform_0(%arg0: i32) -> (i32, i32, i32) {
    %c0_i32 = arith.constant 0 : i32
    %c0_i32_0 = arith.constant 0 : i32
    %c0_i32_1 = arith.constant 0 : i32
    return %arg0, %c0_i32, %c0_i32_0 : i32, i32, i32
  }
  func.func @transform_1(%arg0: i32) -> (i32, i32, i32) {
    %c0_i32 = arith.constant 0 : i32
    %c0_i32_0 = arith.constant 0 : i32
    %c0_i32_1 = arith.constant 0 : i32
    return %arg0, %c0_i32, %c0_i32_0 : i32, i32, i32
  }
  func.func @transform_2(%arg0: i32) -> (i32, i32, i32) {
    %c0_i32 = arith.constant 0 : i32
    %c0_i32_0 = arith.constant 0 : i32
    %c0_i32_1 = arith.constant 0 : i32
    %c0_i32_2 = arith.constant 0 : i32
    return %c0_i32, %c0_i32_0, %c0_i32_1 : i32, i32, i32
  }
  func.func @transform_3(%arg0: i32) -> (i32, i32, i32) {
    %c0_i32 = arith.constant 0 : i32
    %c0_i32_0 = arith.constant 0 : i32
    %c0_i32_1 = arith.constant 0 : i32
    %c0_i32_2 = arith.constant 0 : i32
    return %c0_i32, %c0_i32_0, %c0_i32_1 : i32, i32, i32
  }
  func.func @transform_4(%arg0: i32) -> (i32, i32, i32) {
    %c0_i32 = arith.constant 0 : i32
    %c0_i32_0 = arith.constant 0 : i32
    %c0_i32_1 = arith.constant 0 : i32
    %c0_i32_2 = arith.constant 0 : i32
    return %c0_i32, %c0_i32_0, %c0_i32_1 : i32, i32, i32
  }
  func.func @transform_5(%arg0: i32) -> (i32, i32, i32) {
    %c0_i32 = arith.constant 0 : i32
    %c0_i32_0 = arith.constant 0 : i32
    %c0_i32_1 = arith.constant 0 : i32
    %c0_i32_2 = arith.constant 0 : i32
    return %c0_i32, %c0_i32_0, %c0_i32_1 : i32, i32, i32
  }
  func.func @transform_6(%arg0: i32) -> (i32, i32, i32) {
    %c0_i32 = arith.constant 0 : i32
    %c0_i32_0 = arith.constant 0 : i32
    %c0_i32_1 = arith.constant 0 : i32
    %c0_i32_2 = arith.constant 0 : i32
    return %c0_i32, %c0_i32_0, %c0_i32_1 : i32, i32, i32
  }
  func.func @transform_7(%arg0: i32) -> (i32, i32, i32) {
    %c0_i32 = arith.constant 0 : i32
    %c0_i32_0 = arith.constant 0 : i32
    %c0_i32_1 = arith.constant 0 : i32
    %c0_i32_2 = arith.constant 0 : i32
    return %c0_i32, %c0_i32_0, %c0_i32_1 : i32, i32, i32
  }
  func.func @transform_8(%arg0: i32) -> (i32, i32, i32) {
    %c0_i32 = arith.constant 0 : i32
    %c0_i32_0 = arith.constant 0 : i32
    %c0_i32_1 = arith.constant 0 : i32
    %c0_i32_2 = arith.constant 0 : i32
    return %c0_i32, %c0_i32_0, %c0_i32_1 : i32, i32, i32
  }
  func.func @transform_9(%arg0: i32) -> (i32, i32, i32) {
    %c0_i32 = arith.constant 0 : i32
    %c0_i32_0 = arith.constant 0 : i32
    %c0_i32_1 = arith.constant 0 : i32
    %c0_i32_2 = arith.constant 0 : i32
    return %c0_i32, %c0_i32_0, %c0_i32_1 : i32, i32, i32
  }
  func.func @transform_10(%arg0: i32) -> (i32, i32) {
    %c0_i32 = arith.constant 0 : i32
    %c0_i32_0 = arith.constant 0 : i32
    %c0_i32_1 = arith.constant 0 : i32
    return %c0_i32, %c0_i32_0 : i32, i32
  }
  func.func @transform_11(%arg0: i32) -> (i32, i32) {
    %c0_i32 = arith.constant 0 : i32
    %c0_i32_0 = arith.constant 0 : i32
    %c0_i32_1 = arith.constant 0 : i32
    return %c0_i32, %c0_i32_0 : i32, i32
  }
  func.func @transform_12(%arg0: i32) -> (i32, i32) {
    %c0_i32 = arith.constant 0 : i32
    %c0_i32_0 = arith.constant 0 : i32
    %c0_i32_1 = arith.constant 0 : i32
    return %c0_i32, %c0_i32_0 : i32, i32
  }
  func.func @transform_13(%arg0: i32) -> (i32, i32) {
    %c0_i32 = arith.constant 0 : i32
    %c0_i32_0 = arith.constant 0 : i32
    %c0_i32_1 = arith.constant 0 : i32
    return %c0_i32, %c0_i32_0 : i32, i32
  }
  func.func @transform_14(%arg0: i32) -> (i32, i32, i32) {
    %c0_i32 = arith.constant 0 : i32
    %c0_i32_0 = arith.constant 0 : i32
    %c0_i32_1 = arith.constant 0 : i32
    return %arg0, %c0_i32, %c0_i32_0 : i32, i32, i32
  }
  func.func @transform_15(%arg0: i32) -> (i32, i32, i32, i32) {
    %c0_i32 = arith.constant 0 : i32
    %c0_i32_0 = arith.constant 0 : i32
    %c0_i32_1 = arith.constant 0 : i32
    %c0_i32_2 = arith.constant 0 : i32
    return %arg0, %c0_i32, %c0_i32_0, %c0_i32_1 : i32, i32, i32, i32
  }
  func.func @transform_16(%arg0: i32) -> (i32, i32, i32, i32) {
    %c0_i32 = arith.constant 0 : i32
    %c0_i32_0 = arith.constant 0 : i32
    %c0_i32_1 = arith.constant 0 : i32
    %c0_i32_2 = arith.constant 0 : i32
    return %arg0, %c0_i32, %c0_i32_0, %c0_i32_1 : i32, i32, i32, i32
  }
}

</mosaic_0001>

<bundles_post_ra>
// kernel: tpu_custom_call.1
= control target key start
LH: loop header
LB: loop body
LE: loop exit
PB: predicated region body
PF: predicated region fallthrough
CT: control target
= control target key end

     0   :  { %s6873_s0 = inlined_call_operand.vmem [shape: f32[2,8,32], index: 0, kind: input, shape index: {}]   ;;  %s6874_s1 = inlined_call_operand.vmem [shape: f32[2,16,32], index: 1, kind: input, shape index: {}]   ;;  %s6875_s2 = inlined_call_operand.vmem [shape: f32[4,32,8], index: 2, kind: input, shape index: {}]   ;;  %s6876_s3 = inlined_call_operand.vmem [shape: f32[4,32,8], index: 3, kind: input, shape index: {}]   ;;  %s6877_s4 = inlined_call_operand.vmem [shape: f32[4,32,8], index: 4, kind: input, shape index: {}]   ;;  %s6878_s5 = inlined_call_operand.vmem [shape: f32[4,8,32], index: 5, kind: input, shape index: {}]   ;;  %s6879_s6 = inlined_call_operand.vmem [shape: f32[4,32,8], index: 6, kind: input, shape index: {}]   ;;  %s6880_s7 = inlined_call_operand.vmem [shape: f32[4,32,8], index: 7, kind: input, shape index: {}]   ;;  %s6881_s8 = inlined_call_operand.vmem [shape: f32[4,32,8], index: 8, kind: input, shape index: {}]   ;;  %s6882_s9 = inlined_call_operand.vmem [shape: f32[4,8,32], index: 9, kind: input, shape index: {}]   ;;  %s6883_s10 = inlined_call_operand.vmem [shape: f32[32,64], index: 10, kind: input, shape index: {}]   ;;  %s6884_s11 = inlined_call_operand.vmem [shape: f32[1,64], index: 11, kind: input, shape index: {}]   ;;  %s6885_s12 = inlined_call_operand.vmem [shape: f32[64,32], index: 12, kind: input, shape index: {}]   ;;  %s6886_s13 = inlined_call_operand.vmem [shape: f32[1,32], index: 13, kind: input, shape index: {}]   ;;  %s6887_s14 = inlined_call_operand.hbm [shape: f32[2,8,32], index: 14, kind: output, shape index: {0}]   ;;  %s6888_s15 = inlined_call_operand.hbm [shape: f32[2,4,8,8], index: 15, kind: output, shape index: {1}]   ;;  %s6889_s16 = inlined_call_operand.hbm [shape: f32[2,4,8,16], index: 16, kind: output, shape index: {2}]  }
   0x1   :  { %6898 = sst [smem:[#allocation15_spill]] %s6873_s0 }
   0x2   :  { %6899 = sst [smem:[#allocation16_spill]] %s6874_s1 }
   0x3   :  { %6900 = sst [smem:[#allocation17_spill]] %s6875_s2 }
   0x4   :  { %6901 = sst [smem:[#allocation18_spill]] %s6876_s3 }
   0x5   :  { %22 = vsyncpa [#allocation3], 0 }
   0x6   :  { %24 = vsyncpa [#allocation3 + $0x1], 0 }
   0x7   :  { %25 = vsyncpa [#allocation5], 0 }
   0x8   :  { %27 = vsyncpa [#allocation5 + $0x1], 0  ;;  %s6014_s21 = smov 0   ;;  %s6016_s22 = smov 0  }
   0x9   :  { %s6018_s23 = smov 0   ;;  %s6020_s24 = smov 0  }
   0xa LB: > { %6902 = sst [smem:[#allocation9_spill]] %s5907_s21  ;;  %s6035_s25 = sadd.s32 4294967295, %s5919_s24   ;;  %s5919_s24 = sphi %s6020_s24, %s6920_s24   ;;  %s5915_s23 = sphi %s6018_s23, %s6923_s23   ;;  %s5911_s22 = sphi %s6016_s22, %s6922_s22   ;;  %s5907_s21 = sphi %s6014_s21, %s6921_s21  }
   0xb   : > { %6903 = sst [smem:[#allocation10_spill]] %s5911_s22  ;;  %s6890_s26 = sadd.s32 4294967294, %s5919_s24  }
   0xc   : > { %6904 = sst [smem:[#allocation11_spill]] %s5915_s23  ;;  %s6039_s27 = sadd.s32 1, %s5919_s24  }
   0xd   : > { %6905 = sst [smem:[#allocation12_spill]] %s6039_s27  ;;  %s344_s28 = sadd.s32 1, %s5915_s23 }
   0xe   : > { %s341_s29 = ssub.s32 %s5919_s24, %s6039_s27  ;;  %p354_p0 = scmp.ne.s32.totalorder %s5915_s23, %s5911_s22 }
   0xf   : > { %p342_p1 = scmp.eq.s32.totalorder %s341_s29, 0  ;;  %p355_p2 = scmp.eq.s32.totalorder %s6035_s25, 1 }
  0x10   : > { %p360_p3 = scmp.ne.s32.totalorder %s5911_s22, %s5907_s21  ;;  %p361_p4 = scmp.eq.s32.totalorder %s6890_s26, 1 }
  0x11   : > { %s6052_s30 = scalar_select %p342_p1, %s5915_s23, %s344_s28  }
  0x12   : > { %p6054_p5 = por %p355_p2, %p354_p0  ;;  %p6058_p6 = por %p361_p4, %p360_p3 }
  0x13   : > { %6906 = sst [smem:[#allocation13_spill]] %s6052_s30  ;;  %p4686_p7 = scmp.ge.s32.totalorder %s5919_s24, 1 }
  0x14   : > { %s6908_s17 = scalar_select %p6058_p6, 1, 0 }
  0x15   : > { %p482_p8 = scmp.lt.s32.totalorder %s5919_s24, 3 }
  0x16   : > { %6909 = sst [smem:[#allocation14_spill]] %s6908_s17 }
  0x17   : > { %p483_p9 = pnand %p4686_p7, %p482_p8 }
  0x18   : > { %s6910_s3 = sld [smem:[#allocation18_spill]] (!%p483_p9)  ;;  %s6911_s2 = sld [smem:[#allocation17_spill]] (!%p483_p9)  ;;  %v5921_v3 = vmov (!%p483_p9), 0.0|0.0   ;;  %vm5922_vm0 = vmmov (!%p483_p9), 0   ;;  %v5923_v11 = vmov (!%p483_p9), 0.0   ;;  %v710_v14 = vld [vmem:[%s6877_s4] sm:$0xff] (!%p483_p9) }
  0x19   : > { %486 = sbr.rel (%p483_p9) target bundleno = 8604 (0x219c), region = 76  ;;  %5496 = vmatprep.subr.bf16.mxu1 (!%p483_p9), %v5921_v3  ;;  %5490 = vmatprep.subr.bf16.mxu0 (!%p483_p9), %v5921_v3  ;;  %p546_p10 = scmp.lt.s32.totalorder (!%p483_p9), %s6035_s25, 1  ;;  %v711_v15 = vld [vmem:[%s6877_s4 + $0x8] sm:$0xff] (!%p483_p9)  ;;  %vm562_vm1 = vcmask (!%p483_p9), 261120   ;;  %v712_v18 = vld [vmem:[%s6877_s4 + $0x10] sm:$0xff] (!%p483_p9)  ;;  %v713_v19 = vld [vmem:[%s6877_s4 + $0x18] sm:$0xff] (!%p483_p9) }
  0x1a   : > { %5079 = vmatprep.mubr.msk.f32.mxu1 (!%p483_p9), %vm5922_vm0, %v5923_v11  ;;  %5068 = vmatprep.mubr.msk.f32.mxu0 (!%p483_p9), %vm5922_vm0, %v5923_v11  ;;  %s6912_s26 = sld [smem:[#allocation15_spill]] (!%p483_p9)  ;;  %v5503_v17 = vpack.c.bf16 (!%p483_p9), %v711_v15, %v710_v14  ;;  %v5506_v20 = vpack.c.bf16 (!%p483_p9), %v713_v19, %v712_v18  ;;  %vm784_vm2 = vcmask (!%p483_p9), 64512   ;;  %v946_v35 = vld [vmem:[%s6878_s5] sm:$0xff] (!%p483_p9)  ;;  %s6150_s28 = sand.u32 (!%p483_p9), 1, %s5911_s22   ;;  %v4711_v58 = vld [vmem:[%s6877_s4 + $0x28] sm:$0xff] (!%p483_p9)  ;;  %v4712_v59 = vld [vmem:[%s6877_s4 + $0x30] sm:$0xff] (!%p483_p9) }
  0x1b   : > { %v4710_v57 = vld [vmem:[%s6877_s4 + $0x20] sm:$0xff] (!%p483_p9)  ;;  %v4713_v61 = vld [vmem:[%s6877_s4 + $0x38] sm:$0xff] (!%p483_p9)  ;;  %v4719_v14 = vld [vmem:[%s6878_s5 + $0x8] sm:$0xff] (!%p483_p9)  ;;  %s6913_s1 = sld [smem:[#allocation16_spill]] (!%p483_p9)  ;;  %vm2730_vm4 = vcmask (!%p483_p9), 130048   ;;  %vm4419_vm5 = vcmask (!%p483_p9), 523264  }
  0x1c   : > { %v5521_v60 = vpack.c.bf16 (!%p483_p9), %v4711_v58, %v4710_v57  ;;  %v5524_v62 = vpack.c.bf16 (!%p483_p9), %v4713_v61, %v4712_v59  ;;  %vm6436_vm3 = vmpackc.low (!%p483_p9), %vm784_vm2, %vm784_vm2  ;;  %s4500_s17 = sand.u32 (!%p483_p9), 1, %s6035_s25   ;;  %s4860_s18 = sshll.u32 (!%p483_p9), %s6035_s25, 9 }
  0x1d   : > { %s6756_s21 = scalar_lea.sflag (!%p483_p9), [#allocation5], %s4500_s17  ;;  %s5924_s22 = smov (!%p483_p9), [#allocation4]  }
  0x1e   : > { %v636_v0 = vld [vmem:[%s6910_s3] sm:$0xff] (!%p483_p9)  ;;  %v637_v1 = vld [vmem:[%s6910_s3 + $0x8] sm:$0xff] (!%p483_p9)  ;;  %v638_v6 = vld [vmem:[%s6910_s3 + $0x10] sm:$0xff] (!%p483_p9) }
  0x1f   : > { %v558_v2 = vld [vmem:[%s6911_s2] sm:$0xff] (!%p483_p9)  ;;  %v5497_v4 = vpack.c.bf16 (!%p483_p9), %v637_v1, %v636_v0  ;;  %v559_v5 = vld [vmem:[%s6911_s2 + $0x8] sm:$0xff] (!%p483_p9)  ;;  %v639_v7 = vld [vmem:[%s6910_s3 + $0x18] sm:$0xff] (!%p483_p9) }
  0x20   : > { %v5491_v8 = vpack.c.bf16 %v559_v5, %v558_v2  ;;  %v560_v9 = vld [vmem:[%s6911_s2 + $0x10] sm:$0xff]  ;;  %v561_v10 = vld [vmem:[%s6911_s2 + $0x18] sm:$0xff]  ;;  %v5500_v12 = vpack.c.bf16 %v639_v7, %v638_v6  ;;  %s6096_s23 = scalar_select %p546_p10, %s6035_s25, 1  ;;  %v4700_v39 = vld [vmem:[%s6911_s2 + $0x20] sm:$0xff] }
  0x21   : > { %5498 = vmatpush3.bf16.msra.mxu1 %v5497_v4  ;;  %v5494_v13 = vpack.c.bf16 %v561_v10, %v560_v9  ;;  %v4701_v40 = vld [vmem:[%s6911_s2 + $0x28] sm:$0xff]  ;;  %v4702_v42 = vld [vmem:[%s6911_s2 + $0x30] sm:$0xff]  ;;  %v4703_v43 = vld [vmem:[%s6911_s2 + $0x38] sm:$0xff] }
  0x22   : > { %5492 = vmatpush3.bf16.msra.mxu0 %v5491_v8  ;;  %5499 = vmatprep.subr.bf16.mxu1 %v5921_v3  ;;  %s4690_s27 = sshll.u32 %s6096_s23, 3  ;;  %v5509_v41 = vpack.c.bf16 %v4701_v40, %v4700_v39  ;;  %v5512_v44 = vpack.c.bf16 %v4703_v43, %v4702_v42  ;;  %v4705_v45 = vld [vmem:[%s6910_s3 + $0x20] sm:$0xff]  ;;  %v4706_v46 = vld [vmem:[%s6910_s3 + $0x28] sm:$0xff]  ;;  %v4707_v48 = vld [vmem:[%s6910_s3 + $0x30] sm:$0xff] }
  0x23   : > { %5493 = vmatprep.subr.bf16.mxu0 %v5921_v3  ;;  %s6110_s29 = scalar_lea.vmem %s6912_s26, %s4690_s27  ;;  %s6895_s26 = sshll.u32 %s6150_s28, 5  ;;  %v5515_v47 = vpack.c.bf16 %v4706_v46, %v4705_v45  ;;  %v4708_v49 = vld [vmem:[%s6910_s3 + $0x38] sm:$0xff]  ;;  %v4721_v15 = vld [vmem:[%s6911_s2 + $0x40] sm:$0xff]  ;;  %v4723_v19 = vld [vmem:[%s6911_s2 + $0x50] sm:$0xff] }
  0x24   : > { %v6113_v16 = vld [vmem:[%s6110_s29] sm:$0xff]  ;;  %s6155_s30 = scalar_lea.vmem [#allocation4], %s6895_s26  ;;  %v5518_v52 = vpack.c.bf16 %v4708_v49, %v4707_v48  ;;  %v4744_v57 = vld [vmem:[%s6911_s2 + $0x70] sm:$0xff]  ;;  %v4745_v58 = vld [vmem:[%s6911_s2 + $0x78] sm:$0xff]  ;;  %s4859_s27 = sshll.u32 %s6096_s23, 4 }
  0x25   : > { %5501 = vmatpush3.bf16.msra.mxu1 %v5500_v12  ;;  %v5548_v59 = vpack.c.bf16 %v4745_v58, %v4744_v57  ;;  %v4748_v61 = vld [vmem:[%s6910_s3 + $0x68] sm:$0xff]  ;;  %s554_s19 = scalar_lea.vmem %s6913_s1, %s4859_s27  ;;  %v4776_v57 = vld [vmem:[%s6879_s6 + $0x38] sm:$0xff]  ;;  %s4532_s23 = sshll.u32 %s6155_s30, 4  ;;  %s6754_s23 = int_to_ptr.vmem [resolvable:$true] %s4532_s23 }
  0x26   : > { %5495 = vmatpush3.bf16.msra.mxu0 %v5494_v13  ;;  %5098 = vmatprep.subr.mxu1 %v5923_v11  ;;  %s5801_s27 = sshll.u32 %s5924_s22, 4  ;;  %s5802_s27 = int_to_ptr.vmem [resolvable:$false] %s5801_s27 }
  0x27   : > { %5502 = vmatprep.subr.bf16.mxu0 %v5921_v3  ;;  %s5803_s20 = scalar_lea.vmem %s5802_s27, 1024  ;;  %p5804_p0 = scmp.lt.s32.totalorder %s6754_s23, %s5802_s27 }
  0x28   : > { %5080 = vmatmul.mubr.msk.f32.vlgmr.msra.gmra.mrb[0].mxu1 %vm562_vm1, %v6113_v16 }
  0x29   : > { %5069 = vmatmul.mubr.msk.f32.vlgmr.msra.gmra.mrb[0].mxu0 %vm562_vm1, %v6113_v16  ;;  %5100 = vmatprep.mubr.msk.f32.mxu1 %vm5922_vm0, %v5923_v11 }
  0x2a   : > { %5504 = vmatpush3.bf16.msra.mxu0 %v5503_v17  ;;  %5090 = vmatprep.mubr.msk.f32.mxu0 %vm5922_vm0, %v5923_v11  ;;  %v4722_v17 = vld [vmem:[%s6911_s2 + $0x48] sm:$0xff] }
  0x2b   : > { %5505 = vmatprep.subr.bf16.mxu0 %v5921_v3  ;;  %v5527_v18 = vpack.c.bf16 %v4722_v17, %v4721_v15 }
  0x2e   : > { %5507 = vmatpush3.bf16.msra.mxu0 %v5506_v20  ;;  %v4724_v20 = vld [vmem:[%s6911_s2 + $0x58] sm:$0xff] }
  0x2f   : > { %5093 = vmatprep.subr.mxu0 %v5923_v11 }
  0x31   : > { %5091 = vmatmul.mubr.msk.f32.vlgmr.msra.gmra.mrb[2].mxu0 %vm562_vm1, %v6113_v16 }
  0x32   : > { %5095 = vmatprep.mubr.msk.f32.mxu0 %vm5922_vm0, %v5923_v11 }
  0xfb   : > { %v706_v21 = vpop.f32.mrb[0].mxu1 }
  0xfc   : > { %v5081_v22 = vpop.f32.mrb[1].mxu1  ;;  %5094 = vmatpush3.xpose.msk.msra.mxu0 %vm784_vm2, %v706_v21  ;;  %v632_v23 = vpop.f32.mrb[0].mxu0  ;;  %v5530_v21 = vpack.c.bf16 %v4724_v20, %v4723_v19 }
  0xfd   : > { %v5070_v24 = vpop.f32.mrb[1].mxu0  ;;  %5103 = vmatprep.subr.mxu0 %v5923_v11  ;;  %v4726_v22 = vld [vmem:[%s6910_s3 + $0x40] sm:$0xff] }
  0xff   : > { %5096 = vmatmul.mubr.msk.f32.vlgmr.msra.gmra.mrb[4].mxu0 %vm784_vm2, %v632_v23  ;;  %v4727_v23 = vld [vmem:[%s6910_s3 + $0x48] sm:$0xff] }
 0x100   : > { %5105 = vmatprep.mubr.msk.f32.mxu0 %vm5922_vm0, %v5923_v11  ;;  %5104 = vmatpush3.msra.mxu0 %v946_v35  ;;  %v5533_v24 = vpack.c.bf16 %v4727_v23, %v4726_v22  ;;  %v4732_v35 = vld [vmem:[%s6877_s4 + $0x48] sm:$0xff] }
 0x101   : > { %5514 = vmatprep.subr.bf16.mxu0 %v5921_v3 }
 0x104   : > { %v780_v25 = vpop.f32.mrb[2].mxu0 }
 0x105   : > { %v5092_v26 = vpop.f32.mrb[3].mxu0  ;;  %5099 = vmatpush3.msra.mxu1 %v780_v25  ;;  %v4728_v25 = vld [vmem:[%s6910_s3 + $0x50] sm:$0xff] }
 0x106   : > { %5508 = vmatprep.subr.bf16.mxu1 %v5921_v3  ;;  %v4729_v26 = vld [vmem:[%s6910_s3 + $0x58] sm:$0xff] }
 0x1d2   : > { %v857_v27 = vpop.f32.mrb[4].mxu0 }
 0x1d3   : > { %v5097_v28 = vpop.f32.mrb[5].mxu0  ;;  %v861_v29 = vsel %vm784_vm2, %v857_v27, -inf }
 0x1d4   : > { %862 = vmax.xlane.f32.xlu0 %v861_v29  ;;  %v5536_v29 = vpack.c.bf16 %v4729_v26, %v4728_v25 }
 0x261   : > { %v863_v30 = vpop.xlane.xlu0 %862 }
 0x262   : > { %v864_v31 = vsub.f32 %v857_v27, %v863_v30 }
 0x264   : > { %v865_v32 = vmul.f32 1.442695, %v864_v31 }
 0x266   : > { %5764 = vpow2.f32 %v865_v32 }
 0x270   : > { %v5765_v33 = vpop.eup %5764 }
 0x271   : > { %v867_v34 = vsel %vm784_vm2, %v5765_v33, 0.0 }
 0x272   : > { %868 = vadd.xlane.f32.xlu0 %v867_v34  ;;  %v4731_v34 = vld [vmem:[%s6877_s4 + $0x40] sm:$0xff] }
 0x2ff   : > { %v869_v36 = vpop.xlane.xlu0 %868 }
 0x300   : > { %5766 = vrcp.f32 %v869_v36  ;;  %v4733_v36 = vld [vmem:[%s6877_s4 + $0x50] sm:$0xff] }
 0x30a   : > { %v5767_v37 = vpop.eup %5766 }
 0x30b   : > { %v871_v38 = vmul.f32 %v5767_v37, %v5765_v33  ;;  %v5539_v37 = vpack.c.bf16 %v4732_v35, %v4731_v34  ;;  %v2410_v34 = vld [vmem:[%s6879_s6] sm:$0xff]  ;;  %v2411_v35 = vld [vmem:[%s6879_s6 + $0x8] sm:$0xff] }
 0x30d   : > { %872 = vst.msk [vmem:[%s6155_s30] sm:$0xff] %vm784_vm2, %v871_v38  ;;  %5101 = vmatmul.mubr.msk.f32.vlgmr.msra.gmra.mrb[2].mxu1 %vm784_vm2, %v871_v38  ;;  %v4734_v38 = vld [vmem:[%s6877_s4 + $0x58] sm:$0xff] }
 0x30e   : > { %5116 = vmatprep.mubr.msk.f32.mxu1 %vm5922_vm0, %v5923_v11  ;;  %5510 = vmatpush3.bf16.msra.mxu1 %v5509_v41  ;;  %v5542_v39 = vpack.c.bf16 %v4734_v38, %v4733_v36  ;;  %v5563_v36 = vpack.c.bf16 %v2411_v35, %v2410_v34  ;;  %v2490_v38 = vld [vmem:[%s6880_s7 + $0x18] sm:$0xff]  ;;  %v4784_v34 = vld [vmem:[%s6881_s8 + $0x20] sm:$0xff]  ;;  %v4785_v35 = vld [vmem:[%s6881_s8 + $0x28] sm:$0xff] }
 0x30f   : > { %5511 = vmatprep.subr.bf16.mxu1 %v5921_v3 }
 0x312   : > { %5513 = vmatpush3.bf16.msra.mxu1 %v5512_v44 }
 0x313   : > { %5520 = vmatprep.subr.bf16.mxu1 %v5921_v3 }
 0x315   : > { %5117 = vmatmul.mubr.msk.f32.vlgmr.msra.gmra.mrb[4].mxu1 %vm562_vm1, %v6113_v16 }
 0x316   : > { %5138 = vmatprep.mubr.msk.f32.mxu1 %vm5922_vm0, %v5923_v11  ;;  %5522 = vmatpush3.bf16.msra.mxu1 %v5521_v60  ;;  %v4747_v60 = vld [vmem:[%s6910_s3 + $0x60] sm:$0xff] }
 0x317   : > { %5523 = vmatprep.subr.bf16.mxu1 %v5921_v3 }
 0x31a   : > { %5525 = vmatpush3.bf16.msra.mxu1 %v5524_v62  ;;  %v5551_v62 = vpack.c.bf16 %v4748_v61, %v4747_v60  ;;  %v2572_v61 = vld [vmem:[%s6881_s8] sm:$0xff] }
 0x31b   : > { %5526 = vmatprep.subr.bf16.mxu1 %v5921_v3 }
 0x31d   : > { %5139 = vmatmul.mubr.msk.f32.vlgmr.msra.gmra.mrb[6].mxu1 %vm562_vm1, %v6113_v16 }
 0x31e   : > { %5164 = vmatprep.mubr.msk.f32.mxu1 %vm5922_vm0, %v5923_v11  ;;  %5528 = vmatpush3.bf16.msra.mxu1 %v5527_v18 }
 0x31f   : > { %5529 = vmatprep.subr.bf16.mxu1 %v5921_v3 }
 0x322   : > { %5531 = vmatpush3.bf16.msra.mxu1 %v5530_v21 }
 0x323   : > { %5538 = vmatprep.subr.bf16.mxu1 %v5921_v3 }
 0x325   : > { %5165 = vmatmul.mubr.msk.f32.vlgmr.msra.gmra.mrb[8].mxu1 %vm562_vm1, %v6113_v16 }
 0x326   : > { %5186 = vmatprep.mubr.msk.f32.mxu1 %vm5922_vm0, %v5923_v11  ;;  %5540 = vmatpush3.bf16.msra.mxu1 %v5539_v37  ;;  %v2489_v37 = vld [vmem:[%s6880_s7 + $0x10] sm:$0xff] }
 0x327   : > { %5541 = vmatprep.subr.bf16.mxu1 %v5921_v3 }
 0x32a   : > { %5543 = vmatpush3.bf16.msra.mxu1 %v5542_v39  ;;  %v5572_v39 = vpack.c.bf16 %v2490_v38, %v2489_v37  ;;  %v5605_v37 = vpack.c.bf16 %v4785_v35, %v4784_v34  ;;  %v4787_v38 = vld [vmem:[%s6881_s8 + $0x38] sm:$0xff]  ;;  %v4819_v34 = vld [vmem:[%s6882_s9 + $0x10] sm:$0xff] }
 0x32b   : > { %5194 = vmatprep.subr.mxu1 %v5923_v11 }
 0x32d   : > { %5187 = vmatmul.mubr.msk.f32.vlgmr.msra.gmra.mrb[10].mxu1 %vm562_vm1, %v6113_v16 }
 0x32e   : > { %5196 = vmatprep.mubr.msk.f32.mxu1 %vm5922_vm0, %v5923_v11 }
 0x3e0   : > { %v942_v50 = vpop.f32.mrb[2].mxu1 }
 0x3e1   : > { %v5102_v51 = vpop.f32.mrb[3].mxu1  ;;  %5106 = vmatmul.mubr.msk.f32.vlgmr.msra.gmra.mrb[6].mxu0 %vm784_vm2, %v942_v50  ;;  %v4740_v50 = vld [vmem:[%s6878_s5 + $0x10] sm:$0xff] }
 0x3e2   : > { %5516 = vmatpush3.bf16.msra.mxu0 %v5515_v47  ;;  %5127 = vmatprep.mubr.msk.f32.mxu0 %vm5922_vm0, %v5923_v11 }
 0x3e3   : > { %5517 = vmatprep.subr.bf16.mxu0 %v5921_v3 }
 0x3e6   : > { %5519 = vmatpush3.bf16.msra.mxu0 %v5518_v52 }
 0x3e7   : > { %5141 = vmatprep.subr.mxu0 %v5923_v11 }
 0x3e8   : > { %v1092_v53 = vpop.f32.mrb[4].mxu1 }
 0x3e9   : > { %5128 = vmatmul.mubr.msk.f32.vlgmr.msra.gmra.mrb[8].mxu0 %vm562_vm1, %v6113_v16  ;;  %v5118_v54 = vpop.f32.mrb[5].mxu1 }
 0x3ea   : > { %5143 = vmatprep.mubr.msk.f32.mxu0 %vm5922_vm0, %v5923_v11  ;;  %v4742_v54 = vld [vmem:[%s6911_s2 + $0x60] sm:$0xff] }
 0x3f0   : > { %v1242_v8 = vpop.f32.mrb[6].mxu1 }
 0x3f1   : > { %v5140_v9 = vpop.f32.mrb[7].mxu1 }
 0x3f2   : > { %v4752_v9 = vld [vmem:[%s6877_s4 + $0x60] sm:$0xff] }
 0x3f8   : > { %v1555_v30 = vpop.f32.mrb[8].mxu1 }
 0x3f9   : > { %v5166_v31 = vpop.f32.mrb[9].mxu1 }
 0x3fa   : > { %v2487_v31 = vld [vmem:[%s6880_s7] sm:$0xff] }
 0x400   : > { %v1705_v48 = vpop.f32.mrb[10].mxu1 }
 0x401   : > { %v5188_v49 = vpop.f32.mrb[11].mxu1  ;;  %5195 = vmatpush3.msra.mxu1 %v1705_v48 }
 0x402   : > { %5544 = vmatprep.subr.bf16.mxu1 %v5921_v3 }
 0x4bc   : > { %v1167_v55 = vpop.f32.mrb[8].mxu0 }
 0x4bd   : > { %v5129_v56 = vpop.f32.mrb[9].mxu0  ;;  %5142 = vmatpush3.xpose.msk.msra.mxu0 %vm784_vm2, %v1167_v55  ;;  %v4743_v55 = vld [vmem:[%s6911_s2 + $0x68] sm:$0xff]  ;;  %s6916_s2 = sshll.u32 %s6150_s28, 5 }
 0x4be   : > { %5146 = vmatprep.subr.mxu0 %v5923_v11  ;;  %v5545_v56 = vpack.c.bf16 %v4743_v55, %v4742_v54  ;;  %v4774_v54 = vld [vmem:[%s6879_s6 + $0x28] sm:$0xff] }
 0x4c0   : > { %5144 = vmatmul.mubr.msk.f32.vlgmr.msra.gmra.mrb[10].mxu0 %vm784_vm2, %v1092_v53 }
 0x4c1   : > { %5148 = vmatprep.mubr.msk.f32.mxu0 %vm5922_vm0, %v5923_v11  ;;  %5147 = vmatpush3.msra.mxu0 %v1242_v8 }
 0x4c2   : > { %5151 = vmatprep.subr.mxu0 %v5923_v11 }
 0x593   : > { %v1318_v63 = vpop.f32.mrb[10].mxu0 }
 0x594   : > { %v5145_v0 = vpop.f32.mrb[11].mxu0  ;;  %v1322_v1 = vsel %vm784_vm2, %v1318_v63, -inf }
 0x595   : > { %1323 = vmax.xlane.f32.xlu1 %v1322_v1  ;;  %v4750_v0 = vld [vmem:[%s6910_s3 + $0x78] sm:$0xff] }
 0x622   : > { %v1324_v2 = vpop.xlane.xlu1 %1323 }
 0x623   : > { %v1325_v4 = vsub.f32 %v1318_v63, %v1324_v2  ;;  %v4749_v63 = vld [vmem:[%s6910_s3 + $0x70] sm:$0xff]  ;;  %s6488_s3 = scalar_lea.vmem [#allocation6], %s6916_s2  ;;  %s6751_s2 = scalar_lea.hbm %s6888_s15, %s4860_s18 }
 0x625   : > { %v1326_v5 = vmul.f32 1.442695, %v1325_v4  ;;  %v5554_v4 = vpack.c.bf16 %v4750_v0, %v4749_v63  ;;  %v2574_v63 = vld [vmem:[%s6881_s8 + $0x10] sm:$0xff] }
 0x627   : > { %5768 = vpow2.f32 %v1326_v5 }
 0x631   : > { %v5769_v6 = vpop.eup %5768 }
 0x632   : > { %v1328_v7 = vsel %vm784_vm2, %v5769_v6, 0.0 }
 0x633   : > { %1329 = vadd.xlane.f32.xlu1 %v1328_v7 }
 0x6c0   : > { %v1330_v10 = vpop.xlane.xlu1 %1329 }
 0x6c1   : > { %5770 = vrcp.f32 %v1330_v10  ;;  %v4753_v10 = vld [vmem:[%s6877_s4 + $0x68] sm:$0xff] }
 0x6cb   : > { %v5771_v12 = vpop.eup %5770 }
 0x6cc   : > { %v1332_v13 = vmul.f32 %v5771_v12, %v5769_v6  ;;  %v4754_v12 = vld [vmem:[%s6877_s4 + $0x70] sm:$0xff] }
 0x6ce   : > { %4717 = vst.msk [vmem:[%s6155_s30 + $0x8] sm:$0xff] %vm784_vm2, %v1332_v13  ;;  %5149 = vmatmul.mubr.msk.f32.vlgmr.msra.gmra.mrb[12].mxu0 %vm784_vm2, %v1332_v13  ;;  %v5557_v13 = vpack.c.bf16 %v4753_v10, %v4752_v9 }
 0x6cf   : > { %5152 = vmatpush3.msra.mxu0 %v4719_v14  ;;  %5153 = vmatprep.mubr.msk.f32.mxu0 %vm5922_vm0, %v5923_v11  ;;  %v4755_v14 = vld [vmem:[%s6877_s4 + $0x78] sm:$0xff] }
 0x6d0   : > { %5532 = vmatprep.subr.bf16.mxu0 %v5921_v3  ;;  %v5560_v15 = vpack.c.bf16 %v4755_v14, %v4754_v12 }
 0x7a1   : > { %v1404_v27 = vpop.f32.mrb[12].mxu0 }
 0x7a2   : > { %v5150_v28 = vpop.f32.mrb[13].mxu0  ;;  %5154 = vmatmul.mubr.msk.f32.vlgmr.msra.gmra.mrb[6].mxu0 %vm784_vm2, %v1404_v27 }
 0x7a3   : > { %5534 = vmatpush3.bf16.msra.mxu0 %v5533_v24  ;;  %5175 = vmatprep.mubr.msk.f32.mxu0 %vm5922_vm0, %v5923_v11 }
 0x7a4   : > { %5535 = vmatprep.subr.bf16.mxu0 %v5921_v3 }
 0x7a7   : > { %5537 = vmatpush3.bf16.msra.mxu0 %v5536_v29 }
 0x7a8   : > { %5189 = vmatprep.subr.mxu0 %v5923_v11 }
 0x7aa   : > { %5176 = vmatmul.mubr.msk.f32.vlgmr.msra.gmra.mrb[14].mxu0 %vm562_vm1, %v6113_v16 }
 0x7ab   : > { %5191 = vmatprep.mubr.msk.f32.mxu0 %vm5922_vm0, %v5923_v11 }
 0x87d   : > { %v1630_v32 = vpop.f32.mrb[14].mxu0 }
 0x87e   : > { %v5177_v33 = vpop.f32.mrb[15].mxu0  ;;  %5190 = vmatpush3.xpose.msk.msra.mxu0 %vm784_vm2, %v1630_v32  ;;  %v2488_v32 = vld [vmem:[%s6880_s7 + $0x8] sm:$0xff] }
 0x87f   : > { %5199 = vmatprep.subr.mxu0 %v5923_v11  ;;  %v5568_v33 = vpack.c.bf16 %v2488_v32, %v2487_v31 }
 0x881   : > { %5192 = vmatmul.mubr.msk.f32.vlgmr.msra.gmra.mrb[16].mxu0 %vm784_vm2, %v1555_v30  ;;  %v4761_v30 = vld [vmem:[%s6878_s5 + $0x18] sm:$0xff] }
 0x882   : > { %5201 = vmatprep.mubr.msk.f32.mxu0 %vm5922_vm0, %v5923_v11  ;;  %5200 = vmatpush3.msra.mxu0 %v4740_v50 }
 0x883   : > { %5550 = vmatprep.subr.bf16.mxu0 %v5921_v3 }
 0x954   : > { %v1781_v40 = vpop.f32.mrb[16].mxu0 }
 0x955   : > { %v5193_v41 = vpop.f32.mrb[17].mxu0  ;;  %v1785_v42 = vsel %vm784_vm2, %v1781_v40, -inf }
 0x956   : > { %1786 = vmax.xlane.f32.xlu0 %v1785_v42 }
 0x9e3   : > { %v1787_v43 = vpop.xlane.xlu0 %1786 }
 0x9e4   : > { %v1788_v44 = vsub.f32 %v1781_v40, %v1787_v43  ;;  %v6406_v40 = vld [vmem:[%s554_s19] sm:$0xff]  ;;  %v6411_v43 = vld [vmem:[%s554_s19 + $0x8] sm:$0xff] }
 0x9e6   : > { %v1789_v45 = vmul.f32 1.442695, %v1788_v44  ;;  %v2412_v44 = vld [vmem:[%s6879_s6 + $0x10] sm:$0xff] }
 0x9e8   : > { %5772 = vpow2.f32 %v1789_v45  ;;  %v2413_v45 = vld [vmem:[%s6879_s6 + $0x18] sm:$0xff] }
 0x9f2   : > { %v5773_v46 = vpop.eup %5772 }
 0x9f3   : > { %v1791_v47 = vsel %vm784_vm2, %v5773_v46, 0.0 }
 0x9f4   : > { %1792 = vadd.xlane.f32.xlu1 %v1791_v47 }
 0xa81   : > { %v1793_v51 = vpop.xlane.xlu1 %1792 }
 0xa82   : > { %5774 = vrcp.f32 %v1793_v51 }
 0xa8c   : > { %v5775_v52 = vpop.eup %5774 }
 0xa8d   : > { %v1795_v53 = vmul.f32 %v5775_v52, %v5773_v46  ;;  %v5566_v46 = vpack.c.bf16 %v2413_v45, %v2412_v44  ;;  %v4834_v52 = vld [vmem:[%s6881_s8 + $0x70] sm:$0xff] }
 0xa8f   : > { %4738 = vst.msk [vmem:[%s6155_s30 + $0x10] sm:$0xff] %vm784_vm2, %v1795_v53  ;;  %5197 = vmatmul.mubr.msk.f32.vlgmr.msra.gmra.mrb[12].mxu1 %vm784_vm2, %v1795_v53 }
 0xa90   : > { %5212 = vmatprep.mubr.msk.f32.mxu1 %vm5922_vm0, %v5923_v11  ;;  %5546 = vmatpush3.bf16.msra.mxu1 %v5545_v56  ;;  %v4775_v56 = vld [vmem:[%s6879_s6 + $0x30] sm:$0xff] }
 0xa91   : > { %5547 = vmatprep.subr.bf16.mxu1 %v5921_v3  ;;  %v5595_v60 = vpack.c.bf16 %v4776_v57, %v4775_v56  ;;  %v4797_v57 = vld [vmem:[%s6879_s6 + $0x40] sm:$0xff] }
 0xa94   : > { %5549 = vmatpush3.bf16.msra.mxu1 %v5548_v59 }
 0xa95   : > { %5556 = vmatprep.subr.bf16.mxu1 %v5921_v3 }
 0xa97   : > { %5213 = vmatmul.mubr.msk.f32.vlgmr.msra.gmra.mrb[14].mxu1 %vm562_vm1, %v6113_v16 }
 0xa98   : > { %5234 = vmatprep.mubr.msk.f32.mxu1 %vm5922_vm0, %v5923_v11  ;;  %5558 = vmatpush3.bf16.msra.mxu1 %v5557_v13 }
 0xa99   : > { %5559 = vmatprep.subr.bf16.mxu1 %v5921_v3 }
 0xa9c   : > { %5561 = vmatpush3.bf16.msra.mxu1 %v5560_v15 }
 0xa9d   : > { %5562 = vmatprep.subr.bf16.mxu1 %v5921_v3 }
 0xa9f   : > { %5235 = vmatmul.mubr.msk.f32.vlgmr.msra.gmra.mrb[16].mxu1 %vm562_vm1, %v6113_v16 }
 0xaa0   : > { %5260 = vmatprep.mubr.msk.f32.mxu1 %vm5922_vm0, %v5923_v11  ;;  %5564 = vmatpush3.bf16.msra.mxu1 %v5563_v36  ;;  %v4786_v36 = vld [vmem:[%s6881_s8 + $0x30] sm:$0xff] }
 0xaa1   : > { %5565 = vmatprep.subr.bf16.mxu1 %v5921_v3 }
 0xaa4   : > { %5567 = vmatpush3.bf16.msra.mxu1 %v5566_v46 }
 0xb62   : > { %v1867_v1 = vpop.f32.mrb[12].mxu1 }
 0xb63   : > { %v5198_v2 = vpop.f32.mrb[13].mxu1  ;;  %5202 = vmatmul.mubr.msk.f32.vlgmr.msra.gmra.mrb[6].mxu0 %vm784_vm2, %v1867_v1  ;;  %v2575_v1 = vld [vmem:[%s6881_s8 + $0x18] sm:$0xff] }
 0xb64   : > { %5552 = vmatpush3.bf16.msra.mxu0 %v5551_v62  ;;  %5223 = vmatprep.mubr.msk.f32.mxu0 %vm5922_vm0, %v5923_v11  ;;  %v2573_v62 = vld [vmem:[%s6881_s8 + $0x8] sm:$0xff]  ;;  %v5580_v2 = vpack.c.bf16 %v2575_v1, %v2574_v63  ;;  %v4800_v63 = vld [vmem:[%s6879_s6 + $0x58] sm:$0xff]  ;;  %v4802_v1 = vld [vmem:[%s6880_s7 + $0x40] sm:$0xff] }
 0xb65   : > { %5553 = vmatprep.subr.bf16.mxu0 %v5921_v3  ;;  %v5576_v0 = vpack.c.bf16 %v2573_v62, %v2572_v61  ;;  %v4799_v62 = vld [vmem:[%s6879_s6 + $0x50] sm:$0xff] }
 0xb67   : > { %5577 = vmatprep.subr.bf16.mxu1 %v5576_v0 }
 0xb68   : > { %5555 = vmatpush3.bf16.msra.mxu0 %v5554_v4 }
 0xb69   : > { %5237 = vmatprep.subr.mxu0 %v5923_v11 }
 0xb6a   : > { %v2018_v5 = vpop.f32.mrb[14].mxu1 }
 0xb6b   : > { %5224 = vmatmul.mubr.msk.f32.vlgmr.msra.gmra.mrb[18].mxu0 %vm562_vm1, %v6113_v16  ;;  %v5214_v6 = vpop.f32.mrb[15].mxu1 }
 0xb6c   : > { %5239 = vmatprep.mubr.msk.f32.mxu0 %vm5922_vm0, %v5923_v11 }
 0xb72   : > { %v2168_v25 = vpop.f32.mrb[16].mxu1 }
 0xb73   : > { %v5236_v26 = vpop.f32.mrb[17].mxu1 }
 0xb74   : > { %v4780_v26 = vld [vmem:[%s6880_s7 + $0x30] sm:$0xff] }
 0xc3e   : > { %v2093_v7 = vpop.f32.mrb[18].mxu0 }
 0xc3f   : > { %v5225_v8 = vpop.f32.mrb[19].mxu0  ;;  %5238 = vmatpush3.xpose.msk.msra.mxu0 %vm784_vm2, %v2093_v7 }
 0xc40   : > { %5242 = vmatprep.subr.mxu0 %v5923_v11 }
 0xc42   : > { %5240 = vmatmul.mubr.msk.f32.vlgmr.msra.gmra.mrb[20].mxu0 %vm784_vm2, %v2018_v5 }
 0xc43   : > { %5244 = vmatprep.mubr.msk.f32.mxu0 %vm5922_vm0, %v5923_v11  ;;  %5243 = vmatpush3.msra.mxu0 %v2168_v25 }
 0xc44   : > { %5247 = vmatprep.subr.mxu0 %v5923_v11 }
 0xd15   : > { %v2244_v17 = vpop.f32.mrb[20].mxu0 }
 0xd16   : > { %v5241_v18 = vpop.f32.mrb[21].mxu0  ;;  %v2248_v19 = vsel %vm784_vm2, %v2244_v17, -inf }
 0xd17   : > { %2249 = vmax.xlane.f32.xlu0 %v2248_v19 }
 0xda4   : > { %v2250_v20 = vpop.xlane.xlu0 %2249 }
 0xda5   : > { %v2251_v21 = vsub.f32 %v2244_v17, %v2250_v20 }
 0xda7   : > { %v2252_v22 = vmul.f32 1.442695, %v2251_v21 }
 0xda9   : > { %5776 = vpow2.f32 %v2252_v22  ;;  %v2816_v22 = vld [vmem:[%s6882_s9] sm:$0xff] }
 0xdb3   : > { %v5777_v23 = vpop.eup %5776 }
 0xdb4   : > { %v2254_v24 = vsel %vm784_vm2, %v5777_v23, 0.0 }
 0xdb5   : > { %2255 = vadd.xlane.f32.xlu1 %v2254_v24  ;;  %v4779_v24 = vld [vmem:[%s6880_s7 + $0x28] sm:$0xff] }
 0xe42   : > { %v2256_v27 = vpop.xlane.xlu1 %2255 }
 0xe43   : > { %5778 = vrcp.f32 %v2256_v27  ;;  %v4781_v27 = vld [vmem:[%s6880_s7 + $0x38] sm:$0xff] }
 0xe4d   : > { %v5779_v28 = vpop.eup %5778 }
 0xe4e   : > { %v2258_v29 = vmul.f32 %v5779_v28, %v5777_v23  ;;  %v4778_v23 = vld [vmem:[%s6880_s7 + $0x20] sm:$0xff]  ;;  %v5601_v28 = vpack.c.bf16 %v4781_v27, %v4780_v26 }
 0xe4f   : > { %v5597_v25 = vpack.c.bf16 %v4779_v24, %v4778_v23 }
 0xe50   : > { %4759 = vst.msk [vmem:[%s6155_s30 + $0x18] sm:$0xff] %vm784_vm2, %v2258_v29  ;;  %5245 = vmatmul.mubr.msk.f32.vlgmr.msra.gmra.mrb[22].mxu0 %vm784_vm2, %v2258_v29 }
 0xe51   : > { %5248 = vmatpush3.msra.mxu0 %v4761_v30  ;;  %5249 = vmatprep.mubr.msk.f32.mxu0 %vm5922_vm0, %v5923_v11 }
 0xe52   : > { %5569 = vmatprep.subr.bf16.mxu0 %v5568_v33 }
 0xf23   : > { %v2330_v41 = vpop.f32.mrb[22].mxu0 }
 0xf24   : > { %v5246_v42 = vpop.f32.mrb[23].mxu0  ;;  %5250 = vmatmul.mubr.msk.f32.vlgmr.msra.gmra.mrb[6].mxu0 %vm784_vm2, %v2330_v41 }
 0xf25   : > { %5571 = vmatpush3.bf16.msra.mxu0 %v5568_v33  ;;  %5271 = vmatprep.mubr.msk.f32.mxu0 %vm562_vm1, %v6406_v40 }
 0xf26   : > { %5573 = vmatprep.subr.bf16.mxu0 %v5572_v39 }
 0xf29   : > { %5575 = vmatpush3.bf16.msra.mxu0 %v5572_v39  ;;  %v5609_v39 = vpack.c.bf16 %v4787_v38, %v4786_v36  ;;  %v4821_v36 = vld [vmem:[%s6879_s6 + $0x60] sm:$0xff] }
 0xf2a   : > { %5584 = vmatprep.subr.bf16.mxu0 %v5921_v3 }
 0xf2c   : > { %5272 = vmatmul.mubr.msk.f32.vlgmr.msra.gmra.mrb[24].mxu0 %vm562_vm1, %v6411_v43 }
 0xf2d   : > { %5289 = vmatprep.mubr.msk.f32.mxu0 %vm5922_vm0, %v5923_v11 }
 0xff7   : > { %v6424_v47 = vpop.f32.mrb[6].mxu0 }
 0xff8   : > { %v6428_v48 = vadd.f32 %v6424_v47, %v6113_v16  ;;  %v5251_v49 = vpop.f32.mrb[7].mxu0  ;;  %v4773_v16 = vld [vmem:[%s6879_s6 + $0x20] sm:$0xff] }
 0xff9   : > { %v5592_v55 = vpack.c.bf16 %v4774_v54, %v4773_v16 }
 0xffa   : > { %5261 = vmatmul.mubr.msk.f32.vlgmr.msra.gmra.mrb[18].mxu1 %vm562_vm1, %v6428_v48 }
 0xffb   : > { %5282 = vmatprep.mubr.msk.f32.mxu1 %vm562_vm1, %v6406_v40  ;;  %5579 = vmatpush3.bf16.msra.mxu1 %v5576_v0  ;;  %v5624_v0 = vpack.c.bf16 %v4800_v63, %v4799_v62  ;;  %v4835_v62 = vld [vmem:[%s6881_s8 + $0x78] sm:$0xff] }
 0xffc   : > { %5581 = vmatprep.subr.bf16.mxu1 %v5580_v2  ;;  %v5667_v63 = vpack.c.bf16 %v4835_v62, %v4834_v52 }
 0xfff   : > { %v5273_v50 = vpop.f32.mrb[24].mxu0  ;;  %5583 = vmatpush3.bf16.msra.mxu1 %v5580_v2  ;;  %v4803_v2 = vld [vmem:[%s6880_s7 + $0x48] sm:$0xff] }
0x1000   : > { %v2563_v51 = vpop.f32.mrb[25].mxu0  ;;  %5588 = vmatprep.subr.bf16.mxu1 %v5921_v3 }
0x1001   : > { %v5585_v53 = vpack.c.bf16 %v5273_v50, %v2563_v51 }
0x1002   : > { %5283 = vmatmul.mubr.msk.f32.vlgmr.msra.gmra.mrb[20].mxu1 %vm562_vm1, %v6411_v43 }
0x1003   : > { %5587 = vmatpush3.bf16.xpose.msk.msra.mxu0 %vm6436_vm3, %v5585_v53  ;;  %5296 = vmatprep.mubr.msk.f32.mxu1 %vm5922_vm0, %v5923_v11 }
0x1004   : > { %5591 = vmatprep.subr.bf16.mxu0 %v5921_v3 }
0x10cd   : > { %v2483_v58 = vpop.f32.mrb[18].mxu1 }
0x10ce   : > { %v5262_v59 = vpop.f32.mrb[19].mxu1  ;;  %5290 = vmatmul.mubr.msk.f32.vlgmr.msra.gmra.mrb[26].mxu0 %vm784_vm2, %v2483_v58  ;;  %v4798_v58 = vld [vmem:[%s6879_s6 + $0x48] sm:$0xff] }
0x10cf   : > { %5593 = vmatpush3.bf16.msra.mxu0 %v5592_v55  ;;  %5312 = vmatprep.mubr.msk.f32.mxu0 %vm5922_vm0, %v5923_v11  ;;  %v4795_v55 = vld [vmem:[%s6882_s9 + $0x8] sm:$0xff] }
0x10d0   : > { %5594 = vmatprep.subr.bf16.mxu0 %v5921_v3 }
0x10d3   : > { %5596 = vmatpush3.bf16.msra.mxu0 %v5595_v60  ;;  %v5621_v60 = vpack.c.bf16 %v4798_v58, %v4797_v57 }
0x10d4   : > { %5606 = vmatprep.subr.bf16.mxu0 %v5605_v37 }
0x10d5   : > { %v5284_v15 = vpop.f32.mrb[20].mxu1 }
0x10d6   : > { %5313 = vmatmul.mubr.msk.f32.vlgmr.msra.gmra.mrb[28].mxu0 %vm562_vm1, %v6428_v48  ;;  %v2642_v17 = vpop.f32.mrb[21].mxu1 }
0x10d7   : > { %5334 = vmatprep.mubr.msk.f32.mxu0 %vm562_vm1, %v6406_v40  ;;  %v5589_v18 = vpack.c.bf16 %v5284_v15, %v2642_v17  ;;  %5608 = vmatpush3.bf16.msra.mxu0 %v5605_v37  ;;  %v4808_v17 = vld [vmem:[%s6881_s8 + $0x40] sm:$0xff]  ;;  %v4822_v37 = vld [vmem:[%s6879_s6 + $0x68] sm:$0xff] }
0x10d8   : > { %5610 = vmatprep.subr.bf16.mxu0 %v5609_v39 }
0x10d9   : > { %5590 = vmatpush3.bf16.msra.mxu1 %v5589_v18  ;;  %v4809_v18 = vld [vmem:[%s6881_s8 + $0x48] sm:$0xff] }
0x10da   : > { %5299 = vmatprep.subr.mxu1 %v5923_v11 }
0x10db   : > { %5612 = vmatpush3.bf16.msra.mxu0 %v5609_v39  ;;  %v5650_v39 = vpack.c.bf16 %v4822_v37, %v4821_v36 }
0x10dc   : > { %5617 = vmatprep.subr.bf16.mxu0 %v5921_v3 }
0x10de   : > { %5335 = vmatmul.mubr.msk.f32.vlgmr.msra.gmra.mrb[30].mxu0 %vm562_vm1, %v6411_v43 }
0x10df   : > { %5348 = vmatprep.mubr.msk.f32.mxu0 %vm5922_vm0, %v5923_v11 }
0x11a1   : > { %v2726_v4 = vpop.f32.mrb[26].mxu0 }
0x11a2   : > { %v5291_v5 = vpop.f32.mrb[27].mxu0  ;;  %v2731_v6 = vsel %vm2730_vm4, %v2726_v4, -inf }
0x11a3   : > { %2732 = vmax.xlane.f32.xlu0 %v2731_v6  ;;  %v4804_v5 = vld [vmem:[%s6880_s7 + $0x50] sm:$0xff]  ;;  %v4805_v6 = vld [vmem:[%s6880_s7 + $0x58] sm:$0xff] }
0x11a9   : > { %v2962_v7 = vpop.f32.mrb[28].mxu0 }
0x11aa   : > { %v5314_v8 = vpop.f32.mrb[29].mxu0 }
0x11b1   : > { %v5336_v53 = vpop.f32.mrb[30].mxu0 }
0x11b2   : > { %v3117_v16 = vpop.f32.mrb[31].mxu0 }
0x11b3   : > { %v5618_v54 = vpack.c.bf16 %v5336_v53, %v3117_v16 }
0x11b5   : > { %5619 = vmatpush3.bf16.msra.mxu0 %v5618_v54 }
0x11b6   : > { %5620 = vmatprep.subr.bf16.mxu0 %v5921_v3 }
0x1230   : > { %v2733_v9 = vpop.xlane.xlu0 %2732 }
0x1231   : > { %v2734_v10 = vsub.f32 %v2726_v4, %v2733_v9  ;;  %v5626_v4 = vpack.c.bf16 %v4803_v2, %v4802_v1 }
0x1233   : > { %v2735_v12 = vmul.f32 1.442695, %v2734_v10 }
0x1235   : > { %5780 = vpow2.f32 %v2735_v12 }
0x123f   : > { %v5781_v13 = vpop.eup %5780 }
0x1240   : > { %v2737_v14 = vsel %vm2730_vm4, %v5781_v13, 0.0 }
0x1241   : > { %2738 = vadd.xlane.f32.xlu1 %v2737_v14 }
0x12ce   : > { %v2739_v19 = vpop.xlane.xlu1 %2738 }
0x12cf   : > { %5782 = vrcp.f32 %v2739_v19  ;;  %v4810_v19 = vld [vmem:[%s6881_s8 + $0x50] sm:$0xff] }
0x12d9   : > { %v5783_v20 = vpop.eup %5782 }
0x12da   : > { %v2741_v21 = vmul.f32 %v5783_v20, %v5781_v13  ;;  %v5634_v20 = vpack.c.bf16 %v4809_v18, %v4808_v17  ;;  %v4319_v17 = vld [vmem:[%s6883_s10] sm:$0xff]  ;;  %v4320_v18 = vld [vmem:[%s6883_s10 + $0x8] sm:$0xff] }
0x12dc   : > { %2742 = vst.msk [vmem:[%s6488_s3] sm:$0xff] %vm2730_vm4, %v2741_v21  ;;  %5297 = vmatmul.mubr.msk.f32.vlgmr.msra.gmra.mrb[22].mxu1 %vm2730_vm4, %v2741_v21  ;;  %v4811_v21 = vld [vmem:[%s6881_s8 + $0x58] sm:$0xff] }
0x12dd   : > { %5300 = vmatpush3.msra.mxu1 %v2816_v22  ;;  %5301 = vmatprep.mubr.msk.f32.mxu1 %vm5922_vm0, %v5923_v11  ;;  %v5638_v22 = vpack.c.bf16 %v4811_v21, %v4810_v19  ;;  %v5679_v19 = vpack.c.bf16 %v4320_v18, %v4319_v17 }
0x12de   : > { %5598 = vmatprep.subr.bf16.mxu1 %v5597_v25 }
0x13af   : > { %v2812_v29 = vpop.f32.mrb[22].mxu1 }
0x13b0   : > { %v5298_v30 = vpop.f32.mrb[23].mxu1  ;;  %5302 = vmatmul.mubr.msk.f32.vlgmr.msra.gmra.mrb[24].mxu1 %vm784_vm2, %v2812_v29 }
0x13b1   : > { %5600 = vmatpush3.bf16.msra.mxu1 %v5597_v25  ;;  %5323 = vmatprep.mubr.msk.f32.mxu1 %vm562_vm1, %v6406_v40 }
0x13b2   : > { %5602 = vmatprep.subr.bf16.mxu1 %v5601_v28 }
0x13b5   : > { %5604 = vmatpush3.bf16.msra.mxu1 %v5601_v28 }
0x13b6   : > { %5613 = vmatprep.subr.bf16.mxu1 %v5921_v3 }
0x13b8   : > { %5324 = vmatmul.mubr.msk.f32.vlgmr.msra.gmra.mrb[26].mxu1 %vm562_vm1, %v6411_v43 }
0x13b9   : > { %5341 = vmatprep.mubr.msk.f32.mxu1 %vm5922_vm0, %v5923_v11 }
0x148b   : > { %v5325_v31 = vpop.f32.mrb[26].mxu1 }
0x148c   : > { %v3037_v32 = vpop.f32.mrb[27].mxu1 }
0x148d   : > { %v5614_v33 = vpack.c.bf16 %v5325_v31, %v3037_v32 }
0x148f   : > { %5616 = vmatpush3.bf16.xpose.msk.msra.mxu1 %vm6436_vm3, %v5614_v33 }
0x1490   : > { %5351 = vmatprep.subr.mxu1 %v5923_v11 }
0x1496   : > { %5342 = vmatmul.mubr.msk.f32.vlgmr.msra.gmra.mrb[28].mxu1 %vm784_vm2, %v2962_v7  ;;  %v5630_v7 = vpack.c.bf16 %v4805_v6, %v4804_v5 }
0x1497   : > { %5353 = vmatprep.mubr.msk.f32.mxu1 %vm5922_vm0, %v5923_v11  ;;  %5352 = vmatpush3.msra.mxu1 %v4795_v55 }
0x1498   : > { %5627 = vmatprep.subr.bf16.mxu1 %v5626_v4 }
0x1569   : > { %v3201_v41 = vpop.f32.mrb[28].mxu1 }
0x156a   : > { %v5343_v42 = vpop.f32.mrb[29].mxu1  ;;  %v3205_v44 = vsel %vm2730_vm4, %v3201_v41, -inf }
0x156b   : > { %3206 = vmax.xlane.f32.xlu0 %v3205_v44  ;;  %v4823_v42 = vld [vmem:[%s6879_s6 + $0x70] sm:$0xff]  ;;  %v4824_v44 = vld [vmem:[%s6879_s6 + $0x78] sm:$0xff] }
0x15f8   : > { %v3207_v45 = vpop.xlane.xlu0 %3206 }
0x15f9   : > { %v3208_v46 = vsub.f32 %v3201_v41, %v3207_v45  ;;  %v5653_v45 = vpack.c.bf16 %v4824_v44, %v4823_v42  ;;  %v4411_v42 = vld [vmem:[%s6885_s12 + $0x38] sm:$0xff]  ;;  %v4845_v44 = vld [vmem:[%s6884_s11] ss:$0 sm:$0xff] }
0x15fb   : > { %v3209_v49 = vmul.f32 1.442695, %v3208_v46  ;;  %v4826_v46 = vld [vmem:[%s6880_s7 + $0x60] sm:$0xff] }
0x15fd   : > { %5784 = vpow2.f32 %v3209_v49  ;;  %v4827_v49 = vld [vmem:[%s6880_s7 + $0x68] sm:$0xff] }
0x1607   : > { %v5785_v50 = vpop.eup %5784 }
0x1608   : > { %v3211_v51 = vsel %vm2730_vm4, %v5785_v50, 0.0 }
0x1609   : > { %3212 = vadd.xlane.f32.xlu1 %v3211_v51  ;;  %v4828_v51 = vld [vmem:[%s6880_s7 + $0x70] sm:$0xff] }
0x1696   : > { %v3213_v56 = vpop.xlane.xlu1 %3212 }
0x1697   : > { %5786 = vrcp.f32 %v3213_v56 }
0x16a1   : > { %v5787_v59 = vpop.eup %5786 }
0x16a2   : > { %v3215_v61 = vmul.f32 %v5787_v59, %v5785_v50  ;;  %v5655_v50 = vpack.c.bf16 %v4827_v49, %v4826_v46 }
0x16a4   : > { %4793 = vst.msk [vmem:[%s6488_s3 + $0x8] sm:$0xff] %vm2730_vm4, %v3215_v61  ;;  %5349 = vmatmul.mubr.msk.f32.vlgmr.msra.gmra.mrb[32].mxu0 %vm2730_vm4, %v3215_v61 }
0x16a5   : > { %5622 = vmatpush3.bf16.msra.mxu0 %v5621_v60  ;;  %5364 = vmatprep.mubr.msk.f32.mxu0 %vm5922_vm0, %v5923_v11  ;;  %v4833_v60 = vld [vmem:[%s6881_s8 + $0x68] sm:$0xff] }
0x16a6   : > { %5623 = vmatprep.subr.bf16.mxu0 %v5921_v3 }
0x16a9   : > { %5625 = vmatpush3.bf16.msra.mxu0 %v5624_v0 }
0x16aa   : > { %5635 = vmatprep.subr.bf16.mxu0 %v5634_v20 }
0x16ac   : > { %5365 = vmatmul.mubr.msk.f32.vlgmr.msra.gmra.mrb[34].mxu0 %vm562_vm1, %v6428_v48 }
0x16ad   : > { %5386 = vmatprep.mubr.msk.f32.mxu0 %vm562_vm1, %v6406_v40  ;;  %5637 = vmatpush3.bf16.msra.mxu0 %v5634_v20 }
0x16ae   : > { %5639 = vmatprep.subr.bf16.mxu0 %v5638_v22 }
0x16b1   : > { %5641 = vmatpush3.bf16.msra.mxu0 %v5638_v22  ;;  %v4321_v22 = vld [vmem:[%s6883_s10 + $0x10] sm:$0xff] }
0x16b2   : > { %5646 = vmatprep.subr.bf16.mxu0 %v5921_v3 }
0x16b4   : > { %5387 = vmatmul.mubr.msk.f32.vlgmr.msra.gmra.mrb[36].mxu0 %vm562_vm1, %v6411_v43 }
0x16b5   : > { %5400 = vmatprep.mubr.msk.f32.mxu0 %vm5922_vm0, %v5923_v11 }
0x1777   : > { %v3287_v8 = vpop.f32.mrb[32].mxu0 }
0x1778   : > { %v5350_v9 = vpop.f32.mrb[33].mxu0  ;;  %5354 = vmatmul.mubr.msk.f32.vlgmr.msra.gmra.mrb[24].mxu1 %vm784_vm2, %v3287_v8 }
0x1779   : > { %5629 = vmatpush3.bf16.msra.mxu1 %v5626_v4  ;;  %5375 = vmatprep.mubr.msk.f32.mxu1 %vm562_vm1, %v6406_v40 }
0x177a   : > { %5631 = vmatprep.subr.bf16.mxu1 %v5630_v7 }
0x177d   : > { %5633 = vmatpush3.bf16.msra.mxu1 %v5630_v7 }
0x177e   : > { %5642 = vmatprep.subr.bf16.mxu1 %v5921_v3 }
0x177f   : > { %v3438_v10 = vpop.f32.mrb[34].mxu0 }
0x1780   : > { %v5366_v12 = vpop.f32.mrb[35].mxu0  ;;  %5376 = vmatmul.mubr.msk.f32.vlgmr.msra.gmra.mrb[30].mxu1 %vm562_vm1, %v6411_v43 }
0x1781   : > { %5393 = vmatprep.mubr.msk.f32.mxu1 %vm5922_vm0, %v5923_v11  ;;  %v4843_v12 = vld [vmem:[%s6882_s9 + $0x18] sm:$0xff] }
0x1787   : > { %v5388_v31 = vpop.f32.mrb[36].mxu0 }
0x1788   : > { %v3593_v32 = vpop.f32.mrb[37].mxu0 }
0x1789   : > { %v5647_v33 = vpack.c.bf16 %v5388_v31, %v3593_v32  ;;  %v4409_v31 = vld [vmem:[%s6885_s12 + $0x28] sm:$0xff] }
0x178b   : > { %5648 = vmatpush3.bf16.msra.mxu0 %v5647_v33  ;;  %v5796_v33 = vld [vmem:[%s6110_s29] sm:$0xff]  ;;  %s5797_s29 = scalar_lea.vmem %s6754_s23, 512 }
0x178c   : > { %5649 = vmatprep.subr.bf16.mxu0 %v5921_v3  ;;  %p5798_p11 = scmp.ne.s32.totalorder %s6754_s23, %s5797_s29  ;;  %p5805_p1 = scmp.lt.s32.totalorder %s5803_s20, %s5797_s29 }
0x178e   : > { %p5799_p12 = pnand %p5798_p11, %p6054_p5  ;;  %p5806_p2 = por %p5805_p1, %p5804_p0 }
0x1790   : > { %p5800_p13 = pneg %p5799_p12 }
0x1792   : > { %p5807_p3 = pnand %p5806_p2, %p5800_p13 }
0x1853   : > { %v5377_v13 = vpop.f32.mrb[30].mxu1 }
0x1854   : > { %v3513_v14 = vpop.f32.mrb[31].mxu1 }
0x1855   : > { %v5643_v15 = vpack.c.bf16 %v5377_v13, %v3513_v14 }
0x1857   : > { %5645 = vmatpush3.bf16.xpose.msk.msra.mxu1 %vm6436_vm3, %v5643_v15 }
0x1858   : > { %5403 = vmatprep.subr.mxu1 %v5923_v11 }
0x185e   : > { %5394 = vmatmul.mubr.msk.f32.vlgmr.msra.gmra.mrb[32].mxu1 %vm784_vm2, %v3438_v10 }
0x185f   : > { %5405 = vmatprep.mubr.msk.f32.mxu1 %vm5922_vm0, %v5923_v11  ;;  %5404 = vmatpush3.msra.mxu1 %v4819_v34  ;;  %v1020_v34 = vadd.f32 nan, %v5796_v33 }
0x1860   : > { %5656 = vmatprep.subr.bf16.mxu1 %v5655_v50 }
0x1931   : > { %v3677_v23 = vpop.f32.mrb[32].mxu1 }
0x1932   : > { %v5395_v24 = vpop.f32.mrb[33].mxu1  ;;  %v3681_v25 = vsel %vm2730_vm4, %v3677_v23, -inf }
0x1933   : > { %3682 = vmax.xlane.f32.xlu0 %v3681_v25  ;;  %v4404_v25 = vld [vmem:[%s6885_s12] sm:$0xff] }
0x19c0   : > { %v3683_v26 = vpop.xlane.xlu0 %3682 }
0x19c1   : > { %v3684_v27 = vsub.f32 %v3677_v23, %v3683_v26  ;;  %v4322_v23 = vld [vmem:[%s6883_s10 + $0x18] sm:$0xff]  ;;  %v4405_v26 = vld [vmem:[%s6885_s12 + $0x8] sm:$0xff] }
0x19c2   : > { %v5682_v24 = vpack.c.bf16 %v4322_v23, %v4321_v22 }
0x19c3   : > { %v3685_v28 = vmul.f32 1.442695, %v3684_v27  ;;  %v5685_v27 = vpack.c.bf16 %v4405_v26, %v4404_v25 }
0x19c5   : > { %5788 = vpow2.f32 %v3685_v28  ;;  %v4407_v28 = vld [vmem:[%s6885_s12 + $0x18] sm:$0xff] }
0x19cf   : > { %v5789_v29 = vpop.eup %5788 }
0x19d0   : > { %v3687_v30 = vsel %vm2730_vm4, %v5789_v29, 0.0 }
0x19d1   : > { %3688 = vadd.xlane.f32.xlu1 %v3687_v30  ;;  %v4408_v30 = vld [vmem:[%s6885_s12 + $0x20] sm:$0xff] }
0x19d2   : > { %v5691_v32 = vpack.c.bf16 %v4409_v31, %v4408_v30 }
0x1a5e   : > { %v3689_v35 = vpop.xlane.xlu1 %3688 }
0x1a5f   : > { %5790 = vrcp.f32 %v3689_v35  ;;  %v1483_v35 = vadd.f32 nan, %v1020_v34 }
0x1a61   : > { %v1946_v36 = vadd.f32 nan, %v1483_v35 }
0x1a63   : > { %v2409_v37 = vadd.f32 %v6424_v47, %v1946_v36 }
0x1a69   : > { %v5791_v38 = vpop.eup %5790 }
0x1a6a   : > { %v3691_v41 = vmul.f32 %v5791_v38, %v5789_v29 }
0x1a6c   : > { %4817 = vst.msk [vmem:[%s6488_s3 + $0x10] sm:$0xff] %vm2730_vm4, %v3691_v41  ;;  %5401 = vmatmul.mubr.msk.f32.vlgmr.msra.gmra.mrb[38].mxu0 %vm2730_vm4, %v3691_v41 }
0x1a6d   : > { %5651 = vmatpush3.bf16.msra.mxu0 %v5650_v39  ;;  %5416 = vmatprep.mubr.msk.f32.mxu0 %vm5922_vm0, %v5923_v11 }
0x1a6e   : > { %5652 = vmatprep.subr.bf16.mxu0 %v5921_v3 }
0x1a71   : > { %5654 = vmatpush3.bf16.msra.mxu0 %v5653_v45 }
0x1a74   : > { %5417 = vmatmul.mubr.msk.f32.vlgmr.msra.gmra.mrb[40].mxu0 %vm562_vm1, %v6428_v48  ;;  %v4829_v48 = vld [vmem:[%s6880_s7 + $0x78] sm:$0xff] }
0x1a75   : > { %5438 = vmatprep.mubr.msk.f32.mxu0 %vm562_vm1, %v6406_v40  ;;  %v5659_v53 = vpack.c.bf16 %v4829_v48, %v4828_v51 }
0x1b3f   : > { %v3763_v16 = vpop.f32.mrb[38].mxu0 }
0x1b40   : > { %v5402_v54 = vpop.f32.mrb[39].mxu0  ;;  %5406 = vmatmul.mubr.msk.f32.vlgmr.msra.gmra.mrb[24].mxu1 %vm784_vm2, %v3763_v16 }
0x1b41   : > { %5658 = vmatpush3.bf16.msra.mxu1 %v5655_v50  ;;  %5427 = vmatprep.mubr.msk.f32.mxu1 %vm562_vm1, %v6406_v40  ;;  %v4832_v40 = vld [vmem:[%s6881_s8 + $0x60] sm:$0xff] }
0x1b42   : > { %5660 = vmatprep.subr.bf16.mxu1 %v5659_v53  ;;  %v5663_v61 = vpack.c.bf16 %v4833_v60, %v4832_v40 }
0x1b44   : > { %5664 = vmatprep.subr.bf16.mxu0 %v5663_v61 }
0x1b45   : > { %5662 = vmatpush3.bf16.msra.mxu1 %v5659_v53  ;;  %5666 = vmatpush3.bf16.msra.mxu0 %v5663_v61 }
0x1b46   : > { %5671 = vmatprep.subr.bf16.mxu1 %v5921_v3  ;;  %5668 = vmatprep.subr.bf16.mxu0 %v5667_v63 }
0x1b47   : > { %v3914_v55 = vpop.f32.mrb[40].mxu0 }
0x1b48   : > { %v5418_v56 = vpop.f32.mrb[41].mxu0  ;;  %5428 = vmatmul.mubr.msk.f32.vlgmr.msra.gmra.mrb[34].mxu1 %vm562_vm1, %v6411_v43 }
0x1b49   : > { %5445 = vmatprep.mubr.msk.f32.mxu1 %vm5922_vm0, %v5923_v11  ;;  %5670 = vmatpush3.bf16.msra.mxu0 %v5667_v63 }
0x1b4a   : > { %5675 = vmatprep.subr.bf16.mxu0 %v5921_v3 }
0x1b4c   : > { %5439 = vmatmul.mubr.msk.f32.vlgmr.msra.gmra.mrb[42].mxu0 %vm562_vm1, %v6411_v43 }
0x1b4d   : > { %5452 = vmatprep.mubr.msk.f32.mxu0 %vm5922_vm0, %v5923_v11 }
0x1c1b   : > { %v5429_v57 = vpop.f32.mrb[34].mxu1 }
0x1c1c   : > { %v3989_v58 = vpop.f32.mrb[35].mxu1 }
0x1c1d   : > { %v5672_v59 = vpack.c.bf16 %v5429_v57, %v3989_v58 }
0x1c1f   : > { %5674 = vmatpush3.bf16.xpose.msk.msra.mxu1 %vm6436_vm3, %v5672_v59  ;;  %v5440_v9 = vpop.f32.mrb[42].mxu0 }
0x1c20   : > { %5455 = vmatprep.subr.mxu1 %v5923_v11  ;;  %v4069_v10 = vpop.f32.mrb[43].mxu0 }
0x1c21   : > { %v5676_v43 = vpack.c.bf16 %v5440_v9, %v4069_v10 }
0x1c23   : > { %5677 = vmatpush3.bf16.msra.mxu0 %v5676_v43 }
0x1c24   : > { %5678 = vmatprep.subr.bf16.mxu0 %v5921_v3 }
0x1c26   : > { %5446 = vmatmul.mubr.msk.f32.vlgmr.msra.gmra.mrb[36].mxu1 %vm784_vm2, %v3914_v55 }
0x1c27   : > { %5457 = vmatprep.mubr.msk.f32.mxu1 %vm5922_vm0, %v5923_v11  ;;  %5456 = vmatpush3.msra.mxu1 %v4843_v12 }
0x1c28   : > { %5684 = vmatprep.subr.bf16.mxu1 %v5921_v3 }
0x1cf9   : > { %v4153_v0 = vpop.f32.mrb[36].mxu1 }
0x1cfa   : > { %v5447_v1 = vpop.f32.mrb[37].mxu1  ;;  %v4157_v2 = vsel %vm2730_vm4, %v4153_v0, -inf }
0x1cfb   : > { %4158 = vmax.xlane.f32.xlu0 %v4157_v2 }
0x1d88   : > { %v4159_v4 = vpop.xlane.xlu0 %4158 }
0x1d89   : > { %v4160_v5 = vsub.f32 %v4153_v0, %v4159_v4 }
0x1d8b   : > { %v4161_v6 = vmul.f32 1.442695, %v4160_v5 }
0x1d8d   : > { %5792 = vpow2.f32 %v4161_v6 }
0x1d97   : > { %v5793_v7 = vpop.eup %5792 }
0x1d98   : > { %v4163_v8 = vsel %vm2730_vm4, %v5793_v7, 0.0 }
0x1d99   : > { %4164 = vadd.xlane.f32.xlu1 %v4163_v8 }
0x1e26   : > { %v4165_v13 = vpop.xlane.xlu1 %4164 }
0x1e27   : > { %5794 = vrcp.f32 %v4165_v13 }
0x1e31   : > { %v5795_v14 = vpop.eup %5794 }
0x1e32   : > { %v4167_v15 = vmul.f32 %v5795_v14, %v5793_v7 }
0x1e34   : > { %4841 = vst.msk [vmem:[%s6488_s3 + $0x18] sm:$0xff] %vm2730_vm4, %v4167_v15  ;;  %5453 = vmatmul.mubr.msk.f32.vlgmr.msra.gmra.mrb[44].mxu0 %vm2730_vm4, %v4167_v15 }
0x1e35   : > { %5468 = vmatprep.mubr.msk.f32.mxu0 %vm5922_vm0, %v5923_v11  ;;  %5680 = vmatpush3.bf16.msra.mxu0 %v5679_v19 }
0x1e36   : > { %5681 = vmatprep.subr.bf16.mxu0 %v5921_v3 }
0x1e39   : > { %5683 = vmatpush3.bf16.msra.mxu0 %v5682_v24 }
0x1f07   : > { %v4239_v20 = vpop.f32.mrb[44].mxu0 }
0x1f08   : > { %v5454_v21 = vpop.f32.mrb[45].mxu0  ;;  %5458 = vmatmul.mubr.msk.f32.vlgmr.msra.gmra.mrb[24].mxu1 %vm784_vm2, %v4239_v20 }
0x1f09   : > { %5487 = vmatprep.mubr.msk.f32.mxu1 %vm5922_vm0, %v5923_v11  ;;  %v4406_v11 = vld [vmem:[%s6885_s12 + $0x10] sm:$0xff]  ;;  %5686 = vmatpush3.bf16.msra.mxu1 %v5685_v27 }
0x1f0a   : > { %v5688_v29 = vpack.c.bf16 %v4407_v28, %v4406_v11  ;;  %5687 = vmatprep.subr.bf16.mxu1 %v5921_v3 }
0x1f0d   : > { %5689 = vmatpush3.bf16.msra.mxu1 %v5688_v29 }
0x1f0e   : > { %5690 = vmatprep.subr.bf16.mxu1 %v5921_v3 }
0x1f11   : > { %5692 = vmatpush3.bf16.msra.mxu1 %v5691_v32 }
0x1f12   : > { %5693 = vmatprep.subr.bf16.mxu1 %v5921_v3  ;;  %v4410_v3 = vld [vmem:[%s6885_s12 + $0x30] sm:$0xff] }
0x1f13   : > { %v5694_v47 = vpack.c.bf16 %v4411_v42, %v4410_v3 }
0x1f15   : > { %5695 = vmatpush3.bf16.msra.mxu1 %v5694_v47 }
0x1fdb   : > { %v4314_v38 = vpop.f32.mrb[24].mxu1 }
0x1fdc   : > { %v6731_v39 = vadd.f32 %v4314_v38, %v2409_v37  ;;  %v5459_v41 = vpop.f32.mrb[25].mxu1 }
0x1fde   : > { %5469 = vmatmul.mubr.msk.f32.vlgmr.msra.gmra.mrb[46].mxu0 %vm562_vm1, %v6731_v39 }
0x20b1   : > { %v4399_v45 = vpop.f32.mrb[46].mxu0 }
0x20b2   : > { %v4400_v46 = vadd.f32 %v4845_v44, %v4399_v45  ;;  %v5470_v49 = vpop.f32.mrb[47].mxu0 }
0x20b4   : > { %v4403_v50 = vmax.f32 %v4400_v46, 0.0 }
0x20b6   : > { %5488 = vmatmul.mubr.msk.f32.vlgmr.msra.gmra.mrb[38].mxu1 %vm4419_vm5, %v4403_v50 }
0x20b7   : > { %5810 = shalt.err (!%p5807_p3)
}
0x20b8   : > { %s5811_s30 = scalar_lea.hbm %s6751_s2, 512  ;;  %s5815_s19 = scalar_lea.hbm %s6888_s15, 1024 }
0x20b9   : > { %p5812_p4 = scmp.ne.s32.totalorder %s6751_s2, %s5811_s30  ;;  %p5816_p9 = scmp.lt.u32.totalorder %s6751_s2, %s6888_s15 }
0x20ba   : > { %p5817_p10 = scmp.lt.u32.totalorder %s5815_s19, %s5811_s30  ;;  %p5819_p12 = scmp.lt.u32.totalorder %s5811_s30, %s6751_s2 }
0x20bb   : > { %p5813_p7 = pnand %p5812_p4, %p6054_p5 }
0x20bc   : > { %p5818_p11 = por %p5817_p10, %p5816_p9 }
0x20bd   : > { %p5814_p8 = pneg %p5813_p7 }
0x20be   : > { %p5820_p13 = por %p5819_p12, %p5818_p11 }
0x20c0   : > { %p5821_p0 = pnand %p5820_p13, %p5814_p8 }
0x20c2   : > { %5824 = shalt.err (!%p5821_p0)
}
0x20c3   : > { %s5925_s29 = smov 128   ;;  %s5926_s20 = smov 8  }
0x20c4   : > { %5711 = dma.vmem_to_hbm [thread:$0]  (%p6054_p5), %s6754_s23, 512, %s6751_s2, %s6756_s21, %s5925_s29, %s5925_s29, %s5926_s20  }
0x20c5   : > { %s6788_s26 = scalar_lea.hbm %s6889_s16, %s4860_s18  ;;  %s4548_s19 = sshll.u32 %s6488_s3, 4  ;;  %s6791_s19 = int_to_ptr.vmem [resolvable:$true] %s4548_s19 }
0x20c6   : > { %s5825_s22 = scalar_lea.vmem %s6791_s19, 512  ;;  %s5927_s27 = smov [#allocation6]  }
0x20c7   : > { %p5826_p1 = scmp.ne.s32.totalorder %s6791_s19, %s5825_s22  ;;  %s5829_s1 = sshll.u32 %s5927_s27, 4  ;;  %s5830_s1 = int_to_ptr.vmem [resolvable:$false] %s5829_s1 }
0x20c8   : > { %s5831_s2 = scalar_lea.vmem %s5830_s1, 1024  ;;  %p5832_p4 = scmp.lt.s32.totalorder %s6791_s19, %s5830_s1 }
0x20c9   : > { %p5827_p2 = pnand %p5826_p1, %p6054_p5  ;;  %p5833_p7 = scmp.lt.s32.totalorder %s5831_s2, %s5825_s22 }
0x20cb   : > { %p5828_p3 = pneg %p5827_p2  ;;  %p5834_p8 = por %p5833_p7, %p5832_p4 }
0x20cd   : > { %p5835_p9 = pnand %p5834_p8, %p5828_p3 }
0x20cf   : > { %5838 = shalt.err (!%p5835_p9)
}
0x20d0   : > { %s5839_s3 = scalar_lea.hbm %s6788_s26, 512  ;;  %s5843_s17 = scalar_lea.hbm %s6889_s16, 1024 }
0x20d1   : > { %p5840_p10 = scmp.ne.s32.totalorder %s6788_s26, %s5839_s3  ;;  %p5844_p13 = scmp.lt.u32.totalorder %s6788_s26, %s6889_s16 }
0x20d2   : > { %p5845_p0 = scmp.lt.u32.totalorder %s5843_s17, %s5839_s3  ;;  %p5847_p2 = scmp.lt.u32.totalorder %s5839_s3, %s6788_s26 }
0x20d3   : > { %p5841_p11 = pnand %p5840_p10, %p6054_p5 }
0x20d4   : > { %p5846_p1 = por %p5845_p0, %p5844_p13 }
0x20d5   : > { %p5842_p12 = pneg %p5841_p11 }
0x20d6   : > { %p5848_p3 = por %p5847_p2, %p5846_p1 }
0x20d8   : > { %p5849_p4 = pnand %p5848_p3, %p5842_p12 }
0x20da   : > { %5852 = shalt.err (!%p5849_p4)
}
0x20db   : > { %5712 = dma.vmem_to_hbm [thread:$0]  (%p6054_p5), %s6791_s19, 512, %s6788_s26, %s6756_s21, %s5925_s29, %s5925_s29, %s5926_s20  }
0x20dc   : > { %s4687_s22 = sshll.u32 %s6150_s28, 3  ;;  %v4847_v51 = vld [vmem:[%s6886_s13] ss:$0 sm:$0xff]  ;;  %s4852_s3 = sshll.u32 %s6035_s25, 7 }
0x20dd   : > { %s531_s18 = scalar_lea.vmem [#allocation2], %s4687_s22  ;;  %s6827_s1 = scalar_lea.hbm %s6887_s14, %s4852_s3 }
0x20de   : > { %s4519_s23 = sshll.u32 %s531_s18, 4  ;;  %s4496_s21 = scalar_lea.sflag [#allocation3], %s6150_s28  ;;  %s6829_s23 = int_to_ptr.vmem [resolvable:$true] %s4519_s23 }
0x20df   : > { %s5853_s25 = scalar_lea.vmem %s6829_s23, 128  ;;  %s5928_s29 = smov [#allocation2]  }
0x20e0   : > { %p5854_p7 = scmp.ne.s32.totalorder %s6829_s23, %s5853_s25  ;;  %s5857_s20 = sshll.u32 %s5928_s29, 4  ;;  %s5858_s20 = int_to_ptr.vmem [resolvable:$false] %s5857_s20 }
0x20e1   : > { %s5859_s26 = scalar_lea.vmem %s5858_s20, 256  ;;  %p5860_p10 = scmp.lt.s32.totalorder %s6829_s23, %s5858_s20 }
0x20e2   : > { %p5855_p8 = pnand %p5854_p7, %p6054_p5  ;;  %p5861_p11 = scmp.lt.s32.totalorder %s5859_s26, %s5853_s25 }
0x20e4   : > { %p5856_p9 = pneg %p5855_p8  ;;  %p5862_p12 = por %p5861_p11, %p5860_p10 }
0x20e6   : > { %p5863_p13 = pnand %p5862_p12, %p5856_p9 }
0x2189   : > { %v4489_v48 = vpop.f32.mrb[38].mxu1 }
0x218a   : > { %v4490_v53 = vadd.f32 %v4847_v51, %v4489_v48  ;;  %v5489_v16 = vpop.f32.mrb[39].mxu1 }
0x218c   : > { %v4493_v54 = vadd.f32 %v6731_v39, %v4490_v53 }
0x218e   : > { %4494 = vst.msk [vmem:[%s531_s18] sm:$0xff] %vm562_vm1, %v4493_v54 }
0x218f   : > { %5866 = shalt.err (!%p5863_p13)
}
0x2190   : > { %s5867_s28 = scalar_lea.hbm %s6827_s1, 128  ;;  %s5871_s27 = scalar_lea.hbm %s6887_s14, 256 }
0x2191   : > { %p5868_p0 = scmp.ne.s32.totalorder %s6827_s1, %s5867_s28  ;;  %p5872_p3 = scmp.lt.u32.totalorder %s6827_s1, %s6887_s14 }
0x2192   : > { %p5873_p4 = scmp.lt.u32.totalorder %s5871_s27, %s5867_s28  ;;  %p5875_p8 = scmp.lt.u32.totalorder %s5867_s28, %s6827_s1 }
0x2193   : > { %p5869_p1 = pnand %p5868_p0, %p6054_p5 }
0x2194   : > { %p5874_p7 = por %p5873_p4, %p5872_p3 }
0x2195   : > { %p5870_p2 = pneg %p5869_p1 }
0x2196   : > { %p5876_p9 = por %p5875_p8, %p5874_p7 }
0x2198   : > { %p5877_p10 = pnand %p5876_p9, %p5870_p2 }
0x219a   : > { %5880 = shalt.err (!%p5877_p10)
}
0x219b   : > { %5710 = dma.vmem_to_hbm [thread:$0]  (%p6054_p5), %s6829_s23, 128, %s6827_s1, %s4496_s21  }
0x219c PF: > { %s6917_s18 = sld [smem:[#allocation9_spill]]  ;;  %p5726_p11 = scmp.ge.s32.totalorder %s5919_s24, 2 }
0x219e   : > { %p5717_p12 = pnand %p5726_p11, %p6058_p6 }
0x21a2   : > { %s4563_s30 = sand.u32 1, %s6917_s18  }
0x21a3   : > { %s4564_s25 = scalar_lea.sflag [#allocation3], %s4563_s30 }
0x21a4   : > { %5898 = dma.done.wait (!%p5717_p12), %s4564_s25, 128  }
0x21a5   : > { %5900 = vsyncadd (!%p5717_p12), %s4564_s25, 4294967168  ;;  %s6919_s29 = sadd.s32 4294967294, %s5919_s24  }
0x21a6   : > { %s4572_s20 = sand.u32 1, %s6919_s29  }
0x21a7   : > { %s4573_s26 = scalar_lea.sflag [#allocation5], %s4572_s20 }
0x21a8   : > { %5902 = dma.done.wait (!%p5717_p12), %s4573_s26, 1024  }
0x21a9   : > { %5904 = vsyncadd (!%p5717_p12), %s4573_s26, 4294966272  ;;  %s6920_s24 = sld [smem:[#allocation12_spill]]  ;;  %s6921_s21 = sld [smem:[#allocation10_spill]] }
0x21aa   : > { %s6922_s22 = sld [smem:[#allocation11_spill]]  ;;  %s6923_s23 = sld [smem:[#allocation13_spill]] }
0x21af   : > { %p30_p5 = scmp.ge.s32.totalorder %s6920_s24, 4  }
0x21b1   :  { %32 = sbr.rel (!%p30_p5) target bundleno = 10 (0xa), region = 176 }
0x21b8   :  { %4587 = vsyncpa [#allocation3], 1 }
0x21b9   :  { %4589 = vsyncpa [#allocation3 + $0x1], 1 }
0x21ba   :  { %4590 = vsyncpa [#allocation5], 1 }
0x21bb   :  { %4592 = vsyncpa [#allocation5 + $0x1], 1 }

</bundles_post_ra>
